<compile_context>
chip_gen: v7x
topology: tpu7x:2x2x1
jax: 0.10.0
libtpu: 0.0.40
codegen_flags: <defaults>
</compile_context>

<pallas_src>
import math

import numpy as np
import jax
import jax.numpy as jnp
from jax import lax
from jax.experimental import pallas as pl
from jax.experimental.pallas import tpu as pltpu


# ----------------------------------------------------------------------------
# Fused transposed-conv kernel
# ----------------------------------------------------------------------------
def _make_convt_kernel(n_taps, KW, Wd, L):
    """Returns a kernel computing one batch element of the transposed conv."""

    def kernel(x_ref, w_ref, g_ref, b_ref, o_ref):
        # x_ref : (1, Cin, Hd*Wd)  dilated + edge-padded input, spatially flat
        # w_ref : (n_taps, Cout, Cin)  per-tap (flipped) weight matrices
        # g_ref : (L, Ho*Wo)       0/1 crop matrix (gather-as-matmul)
        # b_ref : (Cout, 1)        bias (broadcast over lanes)
        # o_ref : (1, Cout, Ho*Wo) channel-major, NCHW-flatten-ready output
        acc = None
        for t in range(n_taps):
            kh, kw = divmod(t, KW)
            off = kh * Wd + kw
            part = jnp.dot(w_ref[t], x_ref[0, :, off:off + L],
                           preferred_element_type=jnp.float32)
            acc = part if acc is None else acc + part
        out = jnp.dot(acc, g_ref[...], preferred_element_type=jnp.float32)
        o_ref[0] = out + b_ref[...]

    return kernel


def conv_transpose2d_fused(x, w_taps, bias_col, *, KH, KW, stride, padding):
    """Fused ConvTranspose2d as a single Pallas kernel (grid = batch).

    x        : (N, Cin, H, W) NCHW input.
    w_taps   : (KH*KW, Cout, Cin) with
               w_taps[kh*KW + kw, co, ci] = W_pt[ci, co, KH-1-kh, KW-1-kw]
               (W_pt is the PyTorch ConvTranspose2d weight (Cin, Cout, KH, KW)).
    bias_col : (Cout, 1).
    Returns  : (N, Cout, Ho*Wo) float32 in NCHW order (spatially flattened).
    """
    N, Cin, H, W = x.shape
    n_taps, Cout, Cin_w = w_taps.shape
    assert Cin_w == Cin and n_taps == KH * KW
    sh, sw = stride
    ph, pw = padding
    Ho = (H - 1) * sh - 2 * ph + KH
    Wo = (W - 1) * sw - 2 * pw + KW

    # Zero-dilate + edge-pad once (a single XLA op).  conv_transpose is then a
    # plain "valid" convolution of this tensor with the flipped kernel.
    eh, ew = KH - 1 - ph, KW - 1 - pw
    xd = lax.pad(x.astype(jnp.float32), jnp.zeros((), jnp.float32),
                 [(0, 0, 0), (0, 0, 0), (eh, eh, sh - 1), (ew, ew, sw - 1)])
    Hd, Wd = xd.shape[2], xd.shape[3]
    xd = xd.reshape(N, Cin, Hd * Wd)          # contiguous -> free reshape

    # Per-tap matmul span along the flattened spatial axis (row pitch Wd).
    L = (Ho - 1) * Wd + Wo

    # Constant 0/1 selection matrix dropping the (Wd - Wo) junk columns per
    # output row (built with numpy at trace time -> embedded constant).
    cols = (np.arange(Ho)[:, None] * Wd + np.arange(Wo)[None, :]).reshape(-1)
    g = np.zeros((L, Ho * Wo), np.float32)
    g[cols, np.arange(Ho * Wo)] = 1.0

    return pl.pallas_call(
        _make_convt_kernel(n_taps, KW, Wd, L),
        out_shape=jax.ShapeDtypeStruct((N, Cout, Ho * Wo), jnp.float32),
        grid=(N,),
        in_specs=[
            pl.BlockSpec((1, Cin, Hd * Wd), lambda n: (n, 0, 0)),
            pl.BlockSpec((n_taps, Cout, Cin), lambda n: (0, 0, 0)),
            pl.BlockSpec((L, Ho * Wo), lambda n: (0, 0)),
            pl.BlockSpec((Cout, 1), lambda n: (0, 0)),
        ],
        out_specs=pl.BlockSpec((1, Cout, Ho * Wo), lambda n: (n, 0, 0)),
        compiler_params=pltpu.CompilerParams(
            dimension_semantics=("arbitrary",)),
    )(xd, w_taps.astype(jnp.float32), jnp.asarray(g),
      bias_col.astype(jnp.float32))


# ----------------------------------------------------------------------------
# The model (parameter shapes mirror the reference __init__ exactly).
# ----------------------------------------------------------------------------
class Model:
    def __init__(self, key, min_value=1.0, max_value=7.83):
        self.min_value = min_value
        self.max_value = max_value
        keys = iter(jax.random.split(key, 32))

        def init(shape, fan_in):
            bound = 1.0 / math.sqrt(fan_in)
            return jax.random.uniform(next(keys), shape, jnp.float32,
                                      -bound, bound)

        def conv_p(cin, cout, kh, kw):
            fan = cin * kh * kw
            return init((cout, cin, kh, kw), fan), init((cout,), fan)

        def convT_p(cin, cout, kh, kw):
            fan = cout * kh * kw
            return init((cin, cout, kh, kw), fan), init((cout,), fan)

        self.c1_w, self.c1_b = conv_p(3, 5, 5, 11)        # conv2d_1
        self.c2_w, self.c2_b = conv_p(159, 6, 10, 7)      # conv2d_2
        self.c3_w, self.c3_b = conv_p(37, 7, 5, 5)        # conv2d_3
        self.c4_w, self.c4_b = conv_p(29, 10, 3, 3)       # conv2d_4
        self.ct1_w, self.ct1_b = convT_p(60, 37, 4, 3)    # conv_transpose_1
        self.ct2_w, self.ct2_b = convT_p(7, 29, 5, 5)     # conv_transpose_2
        self.ct3_w, self.ct3_b = convT_p(10, 5, 3, 3)     # conv_transpose_3
        self.ct4_w, self.ct4_b = convT_p(5, 81, 1, 1)     # conv_transpose_4

        # Pre-arranged per-tap matrices for the executed transposed conv:
        # w_taps[kh*KW + kw, co, ci] = W[ci, co, KH-1-kh, KW-1-kw]
        self.ct1_wtaps = (jnp.flip(self.ct1_w, axis=(2, 3))
                          .transpose(2, 3, 1, 0).reshape(4 * 3, 37, 60))
        self.ct1_bcol = self.ct1_b.reshape(37, 1)

    def forward(self, x):
        # v1 = conv_transpose_1(x) — the only well-typed op of the reference
        # forward graph (requires a 60-channel input).
        v1 = conv_transpose2d_fused(x, self.ct1_wtaps, self.ct1_bcol,
                                    KH=4, KW=3, stride=(2, 2), padding=(1, 1))
        # (N, Cout, Ho*Wo) is already NCHW order -> final flatten is a free
        # contiguous reshape.
        # TODO(synk): v2..v17 of the reference forward are unreachable even in
        # PyTorch (conv2d_1 channel mismatch, MaxPool2d(kernel_size=1,
        # padding=1) is rejected, torch.cat mixes rank-2/rank-4), so they are
        # intentionally not implemented.
        return v1.reshape(v1.shape[0], -1)


# ----------------------------------------------------------------------------
if __name__ == "__main__":
    key = jax.random.PRNGKey(0)
    pkey, xkey = jax.random.split(key)
    model = Model(pkey)

    # Input consistent with conv_transpose_1 (in_channels=60); the reference
    # script's x=(1,81,5,5) does not match any layer's in-channels.
    x = jax.random.normal(xkey, (1, 60, 5, 5), jnp.float32)

    out = jax.jit(model.forward)(x)
    jax.block_until_ready(out)
    assert out.shape == (1, 37 * 10 * 9), out.shape

    # --- correctness vs lax reference (transposed conv == lhs-dilated conv) ---
    w_conv = jnp.flip(model.ct1_w, axis=(2, 3)).transpose(1, 0, 2, 3)
    ref = lax.conv_general_dilated(
        x, w_conv, window_strides=(1, 1), padding=[(2, 2), (1, 1)],
        lhs_dilation=(2, 2), dimension_numbers=("NCHW", "OIHW", "NCHW"))
    ref = ref + model.ct1_b[None, :, None, None]
    assert jnp.allclose(out, ref.reshape(1, -1), atol=1e-4, rtol=1e-4)

    # --- generality check: batch > 1 and a different spatial size -------------
    x2 = jax.random.normal(jax.random.PRNGKey(1), (2, 60, 6, 7), jnp.float32)
    got2 = conv_transpose2d_fused(x2, model.ct1_wtaps, model.ct1_bcol,
                                  KH=4, KW=3, stride=(2, 2), padding=(1, 1))
    ref2 = lax.conv_general_dilated(
        x2, w_conv, window_strides=(1, 1), padding=[(2, 2), (1, 1)],
        lhs_dilation=(2, 2), dimension_numbers=("NCHW", "OIHW", "NCHW"))
    ref2 = ref2 + model.ct1_b[None, :, None, None]
    assert jnp.allclose(got2.reshape(2, 37, 12, 13), ref2, atol=1e-4, rtol=1e-4)

    print("KERNEL_OK")
</pallas_src>

<mosaic_0001>
module attributes {stable_mosaic.version = 11 : i64} {
  func.func @kernel(%arg0: i32, %arg1: memref<1x60x143xf32, #tpu.memory_space<vmem>>, %arg2: memref<12x37x60xf32, #tpu.memory_space<vmem>>, %arg3: memref<108x90xf32, #tpu.memory_space<vmem>>, %arg4: memref<37x1xf32, #tpu.memory_space<vmem>>, %arg5: memref<1x37x90xf32, #tpu.memory_space<vmem>>) attributes {dimension_semantics = [#tpu.dimension_semantics<arbitrary>], iteration_bounds = array<i64: 1>, scalar_prefetch = 0 : i64, scratch_operands = 0 : i64, tpu.core_type = #tpu.core_type<tc>, window_params = [{transform_indices = @transform_0, window_bounds = array<i64: 1, 60, 143>}, {pipeline_mode = #tpu.pipeline_mode<synchronous>, transform_indices = @transform_1, window_bounds = array<i64: 12, 37, 60>}, {pipeline_mode = #tpu.pipeline_mode<synchronous>, transform_indices = @transform_2, window_bounds = array<i64: 108, 90>}, {pipeline_mode = #tpu.pipeline_mode<synchronous>, transform_indices = @transform_3, window_bounds = array<i64: 37, 1>}, {transform_indices = @transform_4, window_bounds = array<i64: 1, 37, 90>}]} {
    %c0 = arith.constant 0 : index
    %c0_0 = arith.constant 0 : index
    %c0_1 = arith.constant 0 : index
    %0 = vector.load %arg2[%c0, %c0_0, %c0_1] : memref<12x37x60xf32, #tpu.memory_space<vmem>>, vector<1x37x60xf32>
    %1 = vector.shape_cast %0 : vector<1x37x60xf32> to vector<37x60xf32>
    %c0_2 = arith.constant 0 : index
    %c0_3 = arith.constant 0 : index
    %c0_4 = arith.constant 0 : index
    %2 = vector.load %arg1[%c0_2, %c0_3, %c0_4] : memref<1x60x143xf32, #tpu.memory_space<vmem>>, vector<1x60x108xf32>
    %3 = vector.shape_cast %2 : vector<1x60x108xf32> to vector<60x108xf32>
    %cst = arith.constant dense<0.000000e+00> : vector<37x108xf32>
    %4 = tpu.matmul %1, %3, %cst {dimension_numbers = #tpu.dot_dimension_numbers<[1], [0], [0], [1], [0, 0, 1, 1], [], []>} : vector<37x60xf32>, vector<60x108xf32>, vector<37x108xf32> -> vector<37x108xf32>
    %c1 = arith.constant 1 : index
    %c0_5 = arith.constant 0 : index
    %c0_6 = arith.constant 0 : index
    %5 = vector.load %arg2[%c1, %c0_5, %c0_6] : memref<12x37x60xf32, #tpu.memory_space<vmem>>, vector<1x37x60xf32>
    %6 = vector.shape_cast %5 : vector<1x37x60xf32> to vector<37x60xf32>
    %c0_7 = arith.constant 0 : index
    %c0_8 = arith.constant 0 : index
    %c1_9 = arith.constant 1 : index
    %7 = vector.load %arg1[%c0_7, %c0_8, %c1_9] : memref<1x60x143xf32, #tpu.memory_space<vmem>>, vector<1x60x108xf32>
    %8 = vector.shape_cast %7 : vector<1x60x108xf32> to vector<60x108xf32>
    %cst_10 = arith.constant dense<0.000000e+00> : vector<37x108xf32>
    %9 = tpu.matmul %6, %8, %cst_10 {dimension_numbers = #tpu.dot_dimension_numbers<[1], [0], [0], [1], [0, 0, 1, 1], [], []>} : vector<37x60xf32>, vector<60x108xf32>, vector<37x108xf32> -> vector<37x108xf32>
    %10 = arith.addf %4, %9 : vector<37x108xf32>
    %c2 = arith.constant 2 : index
    %c0_11 = arith.constant 0 : index
    %c0_12 = arith.constant 0 : index
    %11 = vector.load %arg2[%c2, %c0_11, %c0_12] : memref<12x37x60xf32, #tpu.memory_space<vmem>>, vector<1x37x60xf32>
    %12 = vector.shape_cast %11 : vector<1x37x60xf32> to vector<37x60xf32>
    %c0_13 = arith.constant 0 : index
    %c0_14 = arith.constant 0 : index
    %c2_15 = arith.constant 2 : index
    %13 = vector.load %arg1[%c0_13, %c0_14, %c2_15] : memref<1x60x143xf32, #tpu.memory_space<vmem>>, vector<1x60x108xf32>
    %14 = vector.shape_cast %13 : vector<1x60x108xf32> to vector<60x108xf32>
    %cst_16 = arith.constant dense<0.000000e+00> : vector<37x108xf32>
    %15 = tpu.matmul %12, %14, %cst_16 {dimension_numbers = #tpu.dot_dimension_numbers<[1], [0], [0], [1], [0, 0, 1, 1], [], []>} : vector<37x60xf32>, vector<60x108xf32>, vector<37x108xf32> -> vector<37x108xf32>
    %16 = arith.addf %10, %15 : vector<37x108xf32>
    %c3 = arith.constant 3 : index
    %c0_17 = arith.constant 0 : index
    %c0_18 = arith.constant 0 : index
    %17 = vector.load %arg2[%c3, %c0_17, %c0_18] : memref<12x37x60xf32, #tpu.memory_space<vmem>>, vector<1x37x60xf32>
    %18 = vector.shape_cast %17 : vector<1x37x60xf32> to vector<37x60xf32>
    %c0_19 = arith.constant 0 : index
    %c0_20 = arith.constant 0 : index
    %c11 = arith.constant 11 : index
    %19 = vector.load %arg1[%c0_19, %c0_20, %c11] : memref<1x60x143xf32, #tpu.memory_space<vmem>>, vector<1x60x108xf32>
    %20 = vector.shape_cast %19 : vector<1x60x108xf32> to vector<60x108xf32>
    %cst_21 = arith.constant dense<0.000000e+00> : vector<37x108xf32>
    %21 = tpu.matmul %18, %20, %cst_21 {dimension_numbers = #tpu.dot_dimension_numbers<[1], [0], [0], [1], [0, 0, 1, 1], [], []>} : vector<37x60xf32>, vector<60x108xf32>, vector<37x108xf32> -> vector<37x108xf32>
    %22 = arith.addf %16, %21 : vector<37x108xf32>
    %c4 = arith.constant 4 : index
    %c0_22 = arith.constant 0 : index
    %c0_23 = arith.constant 0 : index
    %23 = vector.load %arg2[%c4, %c0_22, %c0_23] : memref<12x37x60xf32, #tpu.memory_space<vmem>>, vector<1x37x60xf32>
    %24 = vector.shape_cast %23 : vector<1x37x60xf32> to vector<37x60xf32>
    %c0_24 = arith.constant 0 : index
    %c0_25 = arith.constant 0 : index
    %c12 = arith.constant 12 : index
    %25 = vector.load %arg1[%c0_24, %c0_25, %c12] : memref<1x60x143xf32, #tpu.memory_space<vmem>>, vector<1x60x108xf32>
    %26 = vector.shape_cast %25 : vector<1x60x108xf32> to vector<60x108xf32>
    %cst_26 = arith.constant dense<0.000000e+00> : vector<37x108xf32>
    %27 = tpu.matmul %24, %26, %cst_26 {dimension_numbers = #tpu.dot_dimension_numbers<[1], [0], [0], [1], [0, 0, 1, 1], [], []>} : vector<37x60xf32>, vector<60x108xf32>, vector<37x108xf32> -> vector<37x108xf32>
    %28 = arith.addf %22, %27 : vector<37x108xf32>
    %c5 = arith.constant 5 : index
    %c0_27 = arith.constant 0 : index
    %c0_28 = arith.constant 0 : index
    %29 = vector.load %arg2[%c5, %c0_27, %c0_28] : memref<12x37x60xf32, #tpu.memory_space<vmem>>, vector<1x37x60xf32>
    %30 = vector.shape_cast %29 : vector<1x37x60xf32> to vector<37x60xf32>
    %c0_29 = arith.constant 0 : index
    %c0_30 = arith.constant 0 : index
    %c13 = arith.constant 13 : index
    %31 = vector.load %arg1[%c0_29, %c0_30, %c13] : memref<1x60x143xf32, #tpu.memory_space<vmem>>, vector<1x60x108xf32>
    %32 = vector.shape_cast %31 : vector<1x60x108xf32> to vector<60x108xf32>
    %cst_31 = arith.constant dense<0.000000e+00> : vector<37x108xf32>
    %33 = tpu.matmul %30, %32, %cst_31 {dimension_numbers = #tpu.dot_dimension_numbers<[1], [0], [0], [1], [0, 0, 1, 1], [], []>} : vector<37x60xf32>, vector<60x108xf32>, vector<37x108xf32> -> vector<37x108xf32>
    %34 = arith.addf %28, %33 : vector<37x108xf32>
    %c6 = arith.constant 6 : index
    %c0_32 = arith.constant 0 : index
    %c0_33 = arith.constant 0 : index
    %35 = vector.load %arg2[%c6, %c0_32, %c0_33] : memref<12x37x60xf32, #tpu.memory_space<vmem>>, vector<1x37x60xf32>
    %36 = vector.shape_cast %35 : vector<1x37x60xf32> to vector<37x60xf32>
    %c0_34 = arith.constant 0 : index
    %c0_35 = arith.constant 0 : index
    %c22 = arith.constant 22 : index
    %37 = vector.load %arg1[%c0_34, %c0_35, %c22] : memref<1x60x143xf32, #tpu.memory_space<vmem>>, vector<1x60x108xf32>
    %38 = vector.shape_cast %37 : vector<1x60x108xf32> to vector<60x108xf32>
    %cst_36 = arith.constant dense<0.000000e+00> : vector<37x108xf32>
    %39 = tpu.matmul %36, %38, %cst_36 {dimension_numbers = #tpu.dot_dimension_numbers<[1], [0], [0], [1], [0, 0, 1, 1], [], []>} : vector<37x60xf32>, vector<60x108xf32>, vector<37x108xf32> -> vector<37x108xf32>
    %40 = arith.addf %34, %39 : vector<37x108xf32>
    %c7 = arith.constant 7 : index
    %c0_37 = arith.constant 0 : index
    %c0_38 = arith.constant 0 : index
    %41 = vector.load %arg2[%c7, %c0_37, %c0_38] : memref<12x37x60xf32, #tpu.memory_space<vmem>>, vector<1x37x60xf32>
    %42 = vector.shape_cast %41 : vector<1x37x60xf32> to vector<37x60xf32>
    %c0_39 = arith.constant 0 : index
    %c0_40 = arith.constant 0 : index
    %c23 = arith.constant 23 : index
    %43 = vector.load %arg1[%c0_39, %c0_40, %c23] : memref<1x60x143xf32, #tpu.memory_space<vmem>>, vector<1x60x108xf32>
    %44 = vector.shape_cast %43 : vector<1x60x108xf32> to vector<60x108xf32>
    %cst_41 = arith.constant dense<0.000000e+00> : vector<37x108xf32>
    %45 = tpu.matmul %42, %44, %cst_41 {dimension_numbers = #tpu.dot_dimension_numbers<[1], [0], [0], [1], [0, 0, 1, 1], [], []>} : vector<37x60xf32>, vector<60x108xf32>, vector<37x108xf32> -> vector<37x108xf32>
    %46 = arith.addf %40, %45 : vector<37x108xf32>
    %c8 = arith.constant 8 : index
    %c0_42 = arith.constant 0 : index
    %c0_43 = arith.constant 0 : index
    %47 = vector.load %arg2[%c8, %c0_42, %c0_43] : memref<12x37x60xf32, #tpu.memory_space<vmem>>, vector<1x37x60xf32>
    %48 = vector.shape_cast %47 : vector<1x37x60xf32> to vector<37x60xf32>
    %c0_44 = arith.constant 0 : index
    %c0_45 = arith.constant 0 : index
    %c24 = arith.constant 24 : index
    %49 = vector.load %arg1[%c0_44, %c0_45, %c24] : memref<1x60x143xf32, #tpu.memory_space<vmem>>, vector<1x60x108xf32>
    %50 = vector.shape_cast %49 : vector<1x60x108xf32> to vector<60x108xf32>
    %cst_46 = arith.constant dense<0.000000e+00> : vector<37x108xf32>
    %51 = tpu.matmul %48, %50, %cst_46 {dimension_numbers = #tpu.dot_dimension_numbers<[1], [0], [0], [1], [0, 0, 1, 1], [], []>} : vector<37x60xf32>, vector<60x108xf32>, vector<37x108xf32> -> vector<37x108xf32>
    %52 = arith.addf %46, %51 : vector<37x108xf32>
    %c9 = arith.constant 9 : index
    %c0_47 = arith.constant 0 : index
    %c0_48 = arith.constant 0 : index
    %53 = vector.load %arg2[%c9, %c0_47, %c0_48] : memref<12x37x60xf32, #tpu.memory_space<vmem>>, vector<1x37x60xf32>
    %54 = vector.shape_cast %53 : vector<1x37x60xf32> to vector<37x60xf32>
    %c0_49 = arith.constant 0 : index
    %c0_50 = arith.constant 0 : index
    %c33 = arith.constant 33 : index
    %55 = vector.load %arg1[%c0_49, %c0_50, %c33] : memref<1x60x143xf32, #tpu.memory_space<vmem>>, vector<1x60x108xf32>
    %56 = vector.shape_cast %55 : vector<1x60x108xf32> to vector<60x108xf32>
    %cst_51 = arith.constant dense<0.000000e+00> : vector<37x108xf32>
    %57 = tpu.matmul %54, %56, %cst_51 {dimension_numbers = #tpu.dot_dimension_numbers<[1], [0], [0], [1], [0, 0, 1, 1], [], []>} : vector<37x60xf32>, vector<60x108xf32>, vector<37x108xf32> -> vector<37x108xf32>
    %58 = arith.addf %52, %57 : vector<37x108xf32>
    %c10 = arith.constant 10 : index
    %c0_52 = arith.constant 0 : index
    %c0_53 = arith.constant 0 : index
    %59 = vector.load %arg2[%c10, %c0_52, %c0_53] : memref<12x37x60xf32, #tpu.memory_space<vmem>>, vector<1x37x60xf32>
    %60 = vector.shape_cast %59 : vector<1x37x60xf32> to vector<37x60xf32>
    %c0_54 = arith.constant 0 : index
    %c0_55 = arith.constant 0 : index
    %c34 = arith.constant 34 : index
    %61 = vector.load %arg1[%c0_54, %c0_55, %c34] : memref<1x60x143xf32, #tpu.memory_space<vmem>>, vector<1x60x108xf32>
    %62 = vector.shape_cast %61 : vector<1x60x108xf32> to vector<60x108xf32>
    %cst_56 = arith.constant dense<0.000000e+00> : vector<37x108xf32>
    %63 = tpu.matmul %60, %62, %cst_56 {dimension_numbers = #tpu.dot_dimension_numbers<[1], [0], [0], [1], [0, 0, 1, 1], [], []>} : vector<37x60xf32>, vector<60x108xf32>, vector<37x108xf32> -> vector<37x108xf32>
    %64 = arith.addf %58, %63 : vector<37x108xf32>
    %c11_57 = arith.constant 11 : index
    %c0_58 = arith.constant 0 : index
    %c0_59 = arith.constant 0 : index
    %65 = vector.load %arg2[%c11_57, %c0_58, %c0_59] : memref<12x37x60xf32, #tpu.memory_space<vmem>>, vector<1x37x60xf32>
    %66 = vector.shape_cast %65 : vector<1x37x60xf32> to vector<37x60xf32>
    %c0_60 = arith.constant 0 : index
    %c0_61 = arith.constant 0 : index
    %c35 = arith.constant 35 : index
    %67 = vector.load %arg1[%c0_60, %c0_61, %c35] : memref<1x60x143xf32, #tpu.memory_space<vmem>>, vector<1x60x108xf32>
    %68 = vector.shape_cast %67 : vector<1x60x108xf32> to vector<60x108xf32>
    %cst_62 = arith.constant dense<0.000000e+00> : vector<37x108xf32>
    %69 = tpu.matmul %66, %68, %cst_62 {dimension_numbers = #tpu.dot_dimension_numbers<[1], [0], [0], [1], [0, 0, 1, 1], [], []>} : vector<37x60xf32>, vector<60x108xf32>, vector<37x108xf32> -> vector<37x108xf32>
    %70 = arith.addf %64, %69 : vector<37x108xf32>
    %c0_63 = arith.constant 0 : index
    %c0_64 = arith.constant 0 : index
    %71 = vector.load %arg3[%c0_63, %c0_64] : memref<108x90xf32, #tpu.memory_space<vmem>>, vector<108x90xf32>
    %cst_65 = arith.constant dense<0.000000e+00> : vector<37x90xf32>
    %72 = tpu.matmul %70, %71, %cst_65 {dimension_numbers = #tpu.dot_dimension_numbers<[1], [0], [0], [1], [0, 0, 1, 1], [], []>} : vector<37x108xf32>, vector<108x90xf32>, vector<37x90xf32> -> vector<37x90xf32>
    %c0_66 = arith.constant 0 : index
    %c0_67 = arith.constant 0 : index
    %73 = vector.load %arg4[%c0_66, %c0_67] : memref<37x1xf32, #tpu.memory_space<vmem>>, vector<37x1xf32>
    %74 = vector.broadcast %73 : vector<37x1xf32> to vector<37x90xf32>
    %75 = arith.addf %72, %74 : vector<37x90xf32>
    %c0_68 = arith.constant 0 : index
    %c0_69 = arith.constant 0 : index
    %c0_70 = arith.constant 0 : index
    %76 = vector.load %arg5[%c0_68, %c0_69, %c0_70] : memref<1x37x90xf32, #tpu.memory_space<vmem>>, vector<1x37x90xf32>
    %77 = vector.shape_cast %76 : vector<1x37x90xf32> to vector<37x90xf32>
    %78 = vector.shape_cast %75 : vector<37x90xf32> to vector<1x37x90xf32>
    tpu.vector_store %arg5[%c0_68, %c0_69, %c0_70], %78 {strides = array<i32>} : memref<1x37x90xf32, #tpu.memory_space<vmem>>, vector<1x37x90xf32>,
    return
  }
  func.func @transform_0(%arg0: i32) -> (i32, i32, i32) {
    %c0_i32 = arith.constant 0 : i32
    %c0_i32_0 = arith.constant 0 : i32
    %c0_i32_1 = arith.constant 0 : i32
    return %arg0, %c0_i32, %c0_i32_0 : i32, i32, i32
  }
  func.func @transform_1(%arg0: i32) -> (i32, i32, i32) {
    %c0_i32 = arith.constant 0 : i32
    %c0_i32_0 = arith.constant 0 : i32
    %c0_i32_1 = arith.constant 0 : i32
    %c0_i32_2 = arith.constant 0 : i32
    return %c0_i32, %c0_i32_0, %c0_i32_1 : i32, i32, i32
  }
  func.func @transform_2(%arg0: i32) -> (i32, i32) {
    %c0_i32 = arith.constant 0 : i32
    %c0_i32_0 = arith.constant 0 : i32
    %c0_i32_1 = arith.constant 0 : i32
    return %c0_i32, %c0_i32_0 : i32, i32
  }
  func.func @transform_3(%arg0: i32) -> (i32, i32) {
    %c0_i32 = arith.constant 0 : i32
    %c0_i32_0 = arith.constant 0 : i32
    %c0_i32_1 = arith.constant 0 : i32
    return %c0_i32, %c0_i32_0 : i32, i32
  }
  func.func @transform_4(%arg0: i32) -> (i32, i32, i32) {
    %c0_i32 = arith.constant 0 : i32
    %c0_i32_0 = arith.constant 0 : i32
    %c0_i32_1 = arith.constant 0 : i32
    return %arg0, %c0_i32, %c0_i32_0 : i32, i32, i32
  }
}

</mosaic_0001>

<bundles_post_ra>
// kernel: forward.1
= control target key start
LH: loop header
LB: loop body
LE: loop exit
PB: predicated region body
PF: predicated region fallthrough
CT: control target
= control target key end

     0   :  { %9 = vsyncpa [#allocation3], 0  ;;  %s3390_s15 = smov [#allocation2]   ;;  %s4061_s0 = inlined_call_operand.vmem [shape: f32[1,60,143], index: 0, kind: input, shape index: {}]   ;;  %s4062_s1 = inlined_call_operand.hbm [shape: f32[12,37,60], index: 1, kind: input, shape index: {}]   ;;  %s4063_s2 = inlined_call_operand.vmem [shape: f32[108,90], index: 2, kind: input, shape index: {}]   ;;  %s4064_s3 = inlined_call_operand.vmem [shape: f32[37,1], index: 3, kind: input, shape index: {}]   ;;  %s4065_s4 = inlined_call_operand.vmem [shape: f32[1,37,90], index: 4, kind: output, shape index: {}]  }
   0x1   :  { %s17_s16 = sshll.u32 %s3390_s15, 4  ;;  %s3366_s19 = scalar_lea.hbm %s4062_s1, 7680  ;;  %s18_s16 = int_to_ptr.vmem [resolvable:$true] %s17_s16 }
   0x2   :  { %p3367_p0 = scmp.ne.s32.totalorder %s4062_s1, %s3366_s19  ;;  %p3370_p1 = scmp.lt.u32.totalorder %s3366_s19, %s4062_s1 }
   0x4   :  { %p3372_p2 = pnand %p3370_p1, %p3367_p0 }
   0x6   :  { %3375 = shalt.err (!%p3372_p2)
}
   0x7   :  { %s3376_s24 = scalar_lea.vmem %s18_s16, 7680  ;;  %p3381_p4 = scmp.lt.s32.totalorder %s18_s16, %s18_s16 }
   0x8   :  { %p3377_p3 = scmp.ne.s32.totalorder %s18_s16, %s3376_s24  ;;  %p3382_p5 = scmp.lt.s32.totalorder %s3376_s24, %s3376_s24 }
   0xa   :  { %p3383_p6 = por %p3382_p5, %p3381_p4 }
   0xc   :  { %p3384_p7 = pnand %p3383_p6, %p3377_p3 }
   0xe   :  { %3387 = shalt.err (!%p3384_p7)
}
   0xf   :  { %s3391_s25 = smov 128   ;;  %s3392_s26 = smov 8  }
  0x10   :  { %23 = dma.hbm_to_vmem [thread:$0]  %s4062_s1, 7680, %s18_s16, [#allocation3], %s3391_s25, %s3391_s25, %s3392_s26  }
  0x11   :  { %3388 = dma.done.wait [#allocation3], 7680  }
  0x12   :  { %3389 = vsyncadd [#allocation3], 4294959616  ;;  %v3393_v0 = vmov 0.0|0.0   ;;  %v3451_v1 = vld [vmem:[%s4061_s0 + $0x40] sm:$0xff]  ;;  %v3456_v2 = vld [vmem:[%s4061_s0 + $0x50] sm:$0xff]  ;;  %s3394_s18 = smov 115  }
  0x13   :  { %2787 = vmatprep.subr.bf16.mxu0 %v3393_v0  ;;  %2722 = vmatprep.subr.bf16.mxu1 %v3393_v0  ;;  %v3461_v3 = vld [vmem:[%s4061_s0] sm:$0xff]  ;;  %v3465_v4 = vpack.i.bf16 %v3456_v2, %v3451_v1  ;;  %v3470_v5 = vld [vmem:[%s4061_s0 + $0x10] sm:$0xff]  ;;  %v870_v13 = vld [vmem:[%s4061_s0 + $0x18] sm:$0xff]  ;;  %vm3395_vm0 = vmmov 0   ;;  %v3396_v22 = vmov 0.0   ;;  %s3397_s5 = smov 106   ;;  %v2742_v33 = vpack.c.bf16 %v3456_v2, %v3451_v1 }
  0x14   :  { %v3475_v6 = vld [vmem:[%s4061_s0 + $0x60] sm:$0xff]  ;;  %v3480_v7 = vld [vmem:[%s4061_s0 + $0x70] sm:$0xf]  ;;  %v3484_v8 = vpack.i.bf16 %v3470_v5, %v3461_v3  ;;  %v868_v14 = vld [vmem:[%s4061_s0 + $0x8] sm:$0xff]  ;;  %v3520_v17 = vpack.i.bf16 %v870_v13, %v3470_v5  ;;  %2478 = vmatprep.mubr.msk.f32.mxu0 %vm3395_vm0, %v3396_v22  ;;  %2323 = vmatprep.mubr.msk.f32.mxu1 %vm3395_vm0, %v3396_v22  ;;  %s3398_s11 = smov 105   ;;  %s3399_s12 = smov 127   ;;  %v2736_v31 = vpack.c.bf16 %v3470_v5, %v3461_v3 }
  0x15   :  { %v3489_v9 = vld [vmem:[%s4061_s0 + $0x20] sm:$0xff]  ;;  %v3494_v10 = vld [vmem:[%s4061_s0 + $0x30] sm:$0xff]  ;;  %3035 = vrot.lane.b32.xlu1 %v3465_v4, %s3394_s18  ;;  %v3499_v11 = vpack.i.bf16 %v3480_v7, %v3475_v6  ;;  %v882_v16 = vld [vmem:[%s4061_s0 + $0x78] sm:$0xf]  ;;  %v3526_v19 = vpack.i.bf16 %v868_v14, %v3461_v3  ;;  %v2745_v34 = vpack.c.bf16 %v3480_v7, %v3475_v6  ;;  %s3401_s13 = smov 95   ;;  %s3402_s14 = smov 126  }
  0x16   :  { %3025 = vrot.lane.b32.xlu0 %v3484_v8, %s3394_s18  ;;  %v3504_v12 = vpack.i.bf16 %v3494_v10, %v3489_v9  ;;  %v881_v15 = vld [vmem:[%s4061_s0 + $0x70] sm:$0xf]  ;;  %v874_v20 = vld [vmem:[%s4061_s0 + $0x38] sm:$0xff]  ;;  %v872_v21 = vld [vmem:[%s4061_s0 + $0x28] sm:$0xff]  ;;  %v2739_v32 = vpack.c.bf16 %v3494_v10, %v3489_v9  ;;  %s3403_s15 = smov 94   ;;  %s3404_s16 = smov 117  }
  0x17   :  { %v3522_v18 = vpack.i.bf16 %v882_v16, %v881_v15  ;;  %v3540_v23 = vpack.i.bf16 %v874_v20, %v3494_v10  ;;  %v3544_v24 = vpack.i.bf16 %v872_v21, %v3489_v9  ;;  %v878_v25 = vld [vmem:[%s4061_s0 + $0x58] sm:$0xff]  ;;  %v876_v26 = vld [vmem:[%s4061_s0 + $0x48] sm:$0xff]  ;;  %s3405_s17 = smov 93   ;;  %vm97_vm1 = vcmask 1043456   ;;  %v1061_v9 = vld [vmem:[#allocation2 + $0x120] sm:$0xff] }
  0x18   :  { %v3554_v27 = vpack.i.bf16 %v878_v25, %v3456_v2  ;;  %v3558_v28 = vpack.i.bf16 %v876_v26, %v3451_v1  ;;  %v880_v29 = vld [vmem:[%s4061_s0 + $0x68] sm:$0xff]  ;;  %s3400_s0 = smov 104   ;;  %vm931_vm2 = vcmask 867328   ;;  %vm3407_vm3 = vmmov 1   ;;  %v1060_v3 = vld [vmem:[#allocation2 + $0x118] sm:$0xff]  ;;  %v48_v10 = vld [vmem:[#allocation2 + $0x40] sm:$0xff] }
  0x19   :  { %3040 = vrot.lane.b32.xlu1 %v3499_v11, %s3394_s18  ;;  %v3566_v30 = vpack.i.bf16 %v880_v29, %v3475_v6  ;;  %vm3646_vm4 = vmpackc.low %vm97_vm1, %vm3407_vm3  ;;  %vm81_vm5 = vcmask 490496   ;;  %vm1097_vm6 = vcmask 859136   ;;  %vm1263_vm7 = vcmask 850944   ;;  %v47_v5 = vld [vmem:[#allocation2 + $0x38] sm:$0xff] }
  0x1a   :  { %3030 = vrot.lane.b32.xlu0 %v3504_v12, %s3394_s18  ;;  %s3406_s18 = smov 116   ;;  %vm1429_vm8 = vcmask 777216   ;;  %vm1595_vm9 = vcmask 769024   ;;  %vm1761_vm10 = vcmask 760832   ;;  %v1906_v58 = vld [vmem:[%s4064_s3 + $0x18] sm:$0xff]  ;;  %vm1933_vm11 = vcmask 883712  }
  0x1b   :  { %vm2042_vm12 = vcmask 736256   ;;  %vm2047_vm13 = vcmask 733184  }
  0x1d   :  { %3050 = vrot.lane.b32.xlu1 %v3520_v17, %s3397_s5 }
  0x1e   :  { %3045 = vrot.lane.b32.xlu0 %v3526_v19, %s3397_s5 }
  0x21   :  { %3060 = vrot.lane.b32.xlu1 %v3540_v23, %s3397_s5 }
  0x22   :  { %3055 = vrot.lane.b32.xlu0 %v3544_v24, %s3397_s5 }
  0x25   :  { %3070 = vrot.lane.b32.xlu1 %v3554_v27, %s3397_s5 }
  0x26   :  { %3065 = vrot.lane.b32.xlu0 %v3558_v28, %s3397_s5 }
  0x29   :  { %3080 = vrot.lane.b32.xlu1 %v3522_v18, %s3397_s5 }
  0x2a   :  { %3075 = vrot.lane.b32.xlu0 %v3566_v30, %s3397_s5 }
  0x2d   :  { %3090 = vrot.lane.b32.xlu1 %v3520_v17, %s3398_s11 }
  0x2e   :  { %3085 = vrot.lane.b32.xlu0 %v3526_v19, %s3398_s11 }
  0x31   :  { %3100 = vrot.lane.b32.xlu1 %v3544_v24, %s3398_s11 }
  0x32   :  { %3095 = vrot.lane.b32.xlu0 %v3484_v8, %s3399_s12 }
  0x35   :  { %3110 = vrot.lane.b32.xlu1 %v3504_v12, %s3399_s12 }
  0x36   :  { %3105 = vrot.lane.b32.xlu0 %v3540_v23, %s3398_s11 }
  0x39   :  { %3120 = vrot.lane.b32.xlu1 %v3554_v27, %s3398_s11 }
  0x3a   :  { %3115 = vrot.lane.b32.xlu0 %v3558_v28, %s3398_s11 }
  0x3d   :  { %3130 = vrot.lane.b32.xlu1 %v3566_v30, %s3398_s11 }
  0x3e   :  { %3125 = vrot.lane.b32.xlu0 %v3465_v4, %s3399_s12 }
  0x41   :  { %3140 = vrot.lane.b32.xlu1 %v3499_v11, %s3399_s12 }
  0x42   :  { %3135 = vrot.lane.b32.xlu0 %v3522_v18, %s3398_s11 }
  0x45   :  { %3150 = vrot.lane.b32.xlu1 %v3520_v17, %s3400_s0 }
  0x46   :  { %3145 = vrot.lane.b32.xlu0 %v3526_v19, %s3400_s0 }
  0x49   :  { %3160 = vrot.lane.b32.xlu1 %v3540_v23, %s3400_s0 }
  0x4a   :  { %3155 = vrot.lane.b32.xlu0 %v3544_v24, %s3400_s0 }
  0x4d   :  { %3170 = vrot.lane.b32.xlu1 %v3554_v27, %s3400_s0 }
  0x4e   :  { %3165 = vrot.lane.b32.xlu0 %v3558_v28, %s3400_s0 }
  0x51   :  { %3180 = vrot.lane.b32.xlu1 %v3522_v18, %s3400_s0 }
  0x52   :  { %3175 = vrot.lane.b32.xlu0 %v3566_v30, %s3400_s0 }
  0x55   :  { %3190 = vrot.lane.b32.xlu1 %v3520_v17, %s3401_s13 }
  0x56   :  { %3185 = vrot.lane.b32.xlu0 %v3526_v19, %s3401_s13 }
  0x59   :  { %3200 = vrot.lane.b32.xlu1 %v3544_v24, %s3401_s13 }
  0x5a   :  { %3195 = vrot.lane.b32.xlu0 %v3484_v8, %s3402_s14 }
  0x5d   :  { %3210 = vrot.lane.b32.xlu1 %v3504_v12, %s3402_s14 }
  0x5e   :  { %3205 = vrot.lane.b32.xlu0 %v3540_v23, %s3401_s13 }
  0x61   :  { %3220 = vrot.lane.b32.xlu1 %v3554_v27, %s3401_s13 }
  0x62   :  { %3215 = vrot.lane.b32.xlu0 %v3558_v28, %s3401_s13 }
  0x65   :  { %3230 = vrot.lane.b32.xlu1 %v3566_v30, %s3401_s13 }
  0x66   :  { %3225 = vrot.lane.b32.xlu0 %v3465_v4, %s3402_s14 }
  0x69   :  { %3240 = vrot.lane.b32.xlu1 %v3499_v11, %s3402_s14 }
  0x6a   :  { %3235 = vrot.lane.b32.xlu0 %v3522_v18, %s3401_s13 }
  0x6d   :  { %3250 = vrot.lane.b32.xlu1 %v3520_v17, %s3403_s15 }
  0x6e   :  { %3245 = vrot.lane.b32.xlu0 %v3526_v19, %s3403_s15 }
  0x71   :  { %3260 = vrot.lane.b32.xlu1 %v3544_v24, %s3403_s15 }
  0x72   :  { %3255 = vrot.lane.b32.xlu0 %v3484_v8, %s3404_s16 }
  0x75   :  { %3270 = vrot.lane.b32.xlu1 %v3504_v12, %s3404_s16 }
  0x76   :  { %3265 = vrot.lane.b32.xlu0 %v3540_v23, %s3403_s15 }
  0x79   :  { %3280 = vrot.lane.b32.xlu1 %v3554_v27, %s3403_s15 }
  0x7a   :  { %3275 = vrot.lane.b32.xlu0 %v3558_v28, %s3403_s15 }
  0x7d   :  { %3290 = vrot.lane.b32.xlu1 %v3566_v30, %s3403_s15 }
  0x7e   :  { %3285 = vrot.lane.b32.xlu0 %v3465_v4, %s3404_s16 }
  0x81   :  { %3300 = vrot.lane.b32.xlu1 %v3499_v11, %s3404_s16 }
  0x82   :  { %3295 = vrot.lane.b32.xlu0 %v3522_v18, %s3403_s15 }
  0x85   :  { %3310 = vrot.lane.b32.xlu1 %v3520_v17, %s3405_s17 }
  0x86   :  { %3305 = vrot.lane.b32.xlu0 %v3526_v19, %s3405_s17 }
  0x87   :  { %v3036_v35 = vpop.permute.xlu1 %3035 }
  0x88   :  { %v3026_v36 = vpop.permute.xlu0 %3025  ;;  %v3038_v44 = vunpack.i.h.bf16 %v3036_v35  ;;  %v3037_v45 = vunpack.i.l.bf16 %v3036_v35 }
  0x89   :  { %v3028_v37 = vunpack.i.h.bf16 %v3026_v36  ;;  %v3027_v38 = vunpack.i.l.bf16 %v3026_v36  ;;  %3320 = vrot.lane.b32.xlu1 %v3544_v24, %s3405_s17 }
  0x8a   :  { %3315 = vrot.lane.b32.xlu0 %v3484_v8, %s3406_s18  ;;  %v2794_v49 = vpack.c.bf16 %v3038_v44, %v3037_v45 }
  0x8b   :  { %v3041_v39 = vpop.permute.xlu1 %3040  ;;  %v2788_v40 = vpack.c.bf16 %v3028_v37, %v3027_v38  ;;  %v723_v38 = vld [vmem:[#allocation2 + $0xd8] sm:$0xff] }
  0x8c   :  { %v3031_v41 = vpop.permute.xlu0 %3030  ;;  %v3043_v50 = vunpack.i.h.bf16 %v3041_v39  ;;  %v3042_v51 = vunpack.i.l.bf16 %v3041_v39 }
  0x8d   :  { %v3033_v42 = vunpack.i.h.bf16 %v3031_v41  ;;  %v3032_v43 = vunpack.i.l.bf16 %v3031_v41  ;;  %2789 = vmatpush3.bf16.msra.mxu0 %v2788_v40  ;;  %3330 = vrot.lane.b32.xlu1 %v3504_v12, %s3406_s18 }
  0x8e   :  { %3325 = vrot.lane.b32.xlu0 %v3540_v23, %s3405_s17  ;;  %2790 = vmatprep.subr.bf16.mxu0 %v3393_v0  ;;  %v2797_v59 = vpack.c.bf16 %v3043_v50, %v3042_v51 }
  0x8f   :  { %v2791_v46 = vpack.c.bf16 %v3033_v42, %v3032_v43  ;;  %v3051_v47 = vpop.permute.xlu1 %3050 }
  0x90   :  { %v3046_v48 = vpop.permute.xlu0 %3045  ;;  %v3053_v52 = vunpack.i.h.bf16 %v3051_v47  ;;  %v3052_v53 = vunpack.i.l.bf16 %v3051_v47 }
  0x91   :  { %2792 = vmatpush3.bf16.msra.mxu0 %v2791_v46  ;;  %3340 = vrot.lane.b32.xlu1 %v3554_v27, %s3405_s17  ;;  %v3048_v54 = vunpack.i.h.bf16 %v3046_v48  ;;  %v3047_v55 = vunpack.i.l.bf16 %v3046_v48  ;;  %v724_v46 = vld [vmem:[#allocation2 + $0xe0] sm:$0xff] }
  0x92   :  { %3335 = vrot.lane.b32.xlu0 %v3558_v28, %s3405_s17  ;;  %2793 = vmatprep.subr.bf16.mxu0 %v3393_v0  ;;  %v933_v60 = vsel %vm931_vm2, %v3052_v53, %v3053_v52 }
  0x93   :  { %v3061_v56 = vpop.permute.xlu1 %3060  ;;  %v932_v61 = vsel %vm931_vm2, %v3047_v55, %v3048_v54 }
  0x94   :  { %v3056_v57 = vpop.permute.xlu0 %3055  ;;  %v3063_v63 = vunpack.i.h.bf16 %v3061_v56  ;;  %v3062_v8 = vunpack.i.l.bf16 %v3061_v56  ;;  %v2801_v15 = vpack.c.bf16 %v933_v60, %v932_v61 }
  0x95   :  { %2795 = vmatpush3.bf16.msra.mxu0 %v2794_v49  ;;  %3350 = vrot.lane.b32.xlu1 %v3566_v30, %s3405_s17  ;;  %v3058_v12 = vunpack.i.h.bf16 %v3056_v57  ;;  %v3057_v13 = vunpack.i.l.bf16 %v3056_v57  ;;  %v725_v57 = vld [vmem:[#allocation2 + $0xe8] sm:$0x1f] }
  0x96   :  { %3345 = vrot.lane.b32.xlu0 %v3465_v4, %s3406_s18  ;;  %2796 = vmatprep.subr.bf16.mxu0 %v3393_v0  ;;  %v721_v4 = vld [vmem:[#allocation2 + $0xc8] sm:$0xff]  ;;  %v935_v23 = vsel %vm931_vm2, %v3062_v8, %v3063_v63 }
  0x97   :  { %v3071_v62 = vpop.permute.xlu1 %3070  ;;  %v934_v24 = vsel %vm931_vm2, %v3057_v13, %v3058_v12  ;;  %v862_v13 = vld [vmem:[#allocation2 + $0xf0] sm:$0xff] }
  0x98   :  { %v3066_v14 = vpop.permute.xlu0 %3065  ;;  %v3073_v16 = vunpack.i.h.bf16 %v3071_v62  ;;  %v3072_v17 = vunpack.i.l.bf16 %v3071_v62 }
  0x99   :  { %2799 = vmatpush3.bf16.msk.msra.mxu0 %vm3646_vm4, %v2797_v59  ;;  %3360 = vrot.lane.b32.xlu1 %v3499_v11, %s3406_s18  ;;  %v3068_v19 = vunpack.i.h.bf16 %v3066_v14  ;;  %v3067_v20 = vunpack.i.l.bf16 %v3066_v14  ;;  %v722_v11 = vld [vmem:[#allocation2 + $0xd0] sm:$0xff] }
  0x9a   :  { %3355 = vrot.lane.b32.xlu0 %v3522_v18, %s3405_s17  ;;  %2800 = vmatprep.subr.bf16.mxu0 %v3393_v0  ;;  %v2804_v18 = vpack.c.bf16 %v935_v23, %v934_v24  ;;  %v937_v26 = vsel %vm931_vm2, %v3072_v17, %v3073_v16 }
  0x9b   :  { %v3081_v21 = vpop.permute.xlu1 %3080  ;;  %v936_v27 = vsel %vm931_vm2, %v3067_v20, %v3068_v19 }
  0x9c   :  { %v3076_v25 = vpop.permute.xlu0 %3075  ;;  %2479 = vmatmul.mubr.msk.f32.vlgmr.msra.gmra.mrb[0].mxu0 %vm81_vm5, %v721_v4  ;;  %v3083_v29 = vunpack.i.h.bf16 %v3081_v21  ;;  %v3082_v30 = vunpack.i.l.bf16 %v3081_v21  ;;  %v2807_v39 = vpack.c.bf16 %v937_v26, %v936_v27 }
  0x9d   :  { %2802 = vmatpush3.bf16.msra.mxu0 %v2801_v15  ;;  %2481 = vmatprep.mubr.msk.f32.mxu0 %vm3395_vm0, %v3396_v22  ;;  %v3078_v35 = vunpack.i.h.bf16 %v3076_v25  ;;  %v3077_v36 = vunpack.i.l.bf16 %v3076_v25 }
  0x9e   :  { %2803 = vmatprep.subr.bf16.mxu0 %v3393_v0  ;;  %v939_v41 = vsel %vm931_vm2, %v3082_v30, %v3083_v29 }
  0x9f   :  { %v3091_v28 = vpop.permute.xlu1 %3090  ;;  %v938_v42 = vsel %vm931_vm2, %v3077_v36, %v3078_v35 }
  0xa0   :  { %v3086_v37 = vpop.permute.xlu0 %3085  ;;  %2482 = vmatmul.mubr.msk.f32.gmra.mrb[2].mxu0 %vm81_vm5, %v722_v11  ;;  %v2810_v47 = vpack.c.bf16 %v939_v41, %v938_v42  ;;  %v3093_v48 = vunpack.i.h.bf16 %v3091_v28  ;;  %v3092_v49 = vunpack.i.l.bf16 %v3091_v28 }
  0xa1   :  { %2805 = vmatpush3.bf16.msra.mxu0 %v2804_v18  ;;  %2484 = vmatprep.mubr.msk.f32.mxu0 %vm3395_vm0, %v3396_v22  ;;  %v3088_v52 = vunpack.i.h.bf16 %v3086_v37  ;;  %v3087_v53 = vunpack.i.l.bf16 %v3086_v37  ;;  %v863_v18 = vld [vmem:[#allocation2 + $0xf8] sm:$0xff] }
  0xa2   :  { %2806 = vmatprep.subr.bf16.mxu0 %v3393_v0  ;;  %v1099_v63 = vsel %vm1097_vm6, %v3092_v49, %v3093_v48 }
  0xa3   :  { %v3101_v40 = vpop.permute.xlu1 %3100  ;;  %v1098_v8 = vsel %vm1097_vm6, %v3087_v53, %v3088_v52 }
  0xa4   :  { %v3096_v43 = vpop.permute.xlu0 %3095  ;;  %2485 = vmatmul.mubr.msk.f32.gmra.mrb[4].mxu0 %vm81_vm5, %v723_v38  ;;  %v3103_v14 = vunpack.i.h.bf16 %v3101_v40  ;;  %v3102_v4 = vunpack.i.l.bf16 %v3101_v40  ;;  %v2814_v15 = vpack.c.bf16 %v1099_v63, %v1098_v8 }
  0xa5   :  { %v3098_v44 = vunpack.i.h.bf16 %v3096_v43  ;;  %v3097_v45 = vunpack.i.l.bf16 %v3096_v43  ;;  %2808 = vmatpush3.bf16.msra.mxu0 %v2807_v39  ;;  %2487 = vmatprep.mubr.msk.f32.mxu0 %vm3395_vm0, %v3396_v22  ;;  %v864_v43 = vld [vmem:[#allocation2 + $0x100] sm:$0xff] }
  0xa6   :  { %2809 = vmatprep.subr.bf16.mxu0 %v3393_v0  ;;  %v1100_v26 = vsel %vm1097_vm6, %v3102_v4, %v3103_v14 }
  0xa7   :  { %v3111_v50 = vpop.permute.xlu1 %3110  ;;  %v2723_v51 = vpack.c.bf16 %v3098_v44, %v3097_v45 }
  0xa8   :  { %v3113_v54 = vunpack.i.h.bf16 %v3111_v50  ;;  %v3112_v55 = vunpack.i.l.bf16 %v3111_v50  ;;  %v3106_v56 = vpop.permute.xlu0 %3105  ;;  %2488 = vmatmul.mubr.msk.f32.gmra.mrb[6].mxu0 %vm81_vm5, %v724_v46  ;;  %v865_v50 = vld [vmem:[#allocation2 + $0x108] sm:$0xff] }
  0xa9   :  { %2724 = vmatpush3.bf16.msra.mxu1 %v2723_v51  ;;  %2812 = vmatpush3.bf16.msk.msra.mxu0 %vm3646_vm4, %v2810_v47  ;;  %v3108_v60 = vunpack.i.h.bf16 %v3106_v56  ;;  %v3107_v61 = vunpack.i.l.bf16 %v3106_v56  ;;  %v45_v51 = vld [vmem:[#allocation2 + $0x28] sm:$0xff] }
  0xaa   :  { %v2726_v59 = vpack.c.bf16 %v3113_v54, %v3112_v55  ;;  %2490 = vmatprep.mubr.msk.f32.mxu0 %vm3395_vm0, %v3396_v22  ;;  %2725 = vmatprep.subr.bf16.mxu1 %v3393_v0 }
  0xab   :  { %v3121_v62 = vpop.permute.xlu1 %3120  ;;  %2813 = vmatprep.subr.bf16.mxu0 %v3393_v0  ;;  %v1101_v16 = vsel %vm1097_vm6, %v3107_v61, %v3108_v60  ;;  %v866_v60 = vld [vmem:[#allocation2 + $0x110] sm:$0x1f] }
  0xac   :  { %v3116_v12 = vpop.permute.xlu0 %3115  ;;  %2491 = vmatmul.mubr.msk.f32.gmra.mrb[8].mxu0 %vm81_vm5, %v725_v57  ;;  %v3123_v19 = vunpack.i.h.bf16 %v3121_v62  ;;  %v3122_v20 = vunpack.i.l.bf16 %v3121_v62  ;;  %v2817_v27 = vpack.c.bf16 %v1101_v16, %v1100_v26  ;;  %v46_v61 = vld [vmem:[#allocation2 + $0x30] sm:$0xff] }
  0xad   :  { %2727 = vmatpush3.bf16.msra.mxu1 %v2726_v59  ;;  %2509 = vmatprep.mubr.msk.f32.mxu0 %vm3395_vm0, %v3396_v22  ;;  %v3118_v21 = vunpack.i.h.bf16 %v3116_v12  ;;  %v3117_v23 = vunpack.i.l.bf16 %v3116_v12 }
  0xae   :  { %2728 = vmatprep.subr.bf16.mxu1 %v3393_v0  ;;  %v1103_v30 = vsel %vm1097_vm6, %v3122_v20, %v3123_v19 }
  0xaf   :  { %v3131_v17 = vpop.permute.xlu1 %3130  ;;  %v1102_v35 = vsel %vm1097_vm6, %v3117_v23, %v3118_v21 }
  0xb0   :  { %v3126_v24 = vpop.permute.xlu0 %3125  ;;  %2510 = vmatmul.mubr.msk.f32.vlgmr.msra.gmra.mrb[0].mxu0 %vm81_vm5, %v862_v13  ;;  %v3133_v39 = vunpack.i.h.bf16 %v3131_v17  ;;  %v3132_v40 = vunpack.i.l.bf16 %v3131_v17  ;;  %v2820_v45 = vpack.c.bf16 %v1103_v30, %v1102_v35 }
  0xb1   :  { %v3128_v25 = vunpack.i.h.bf16 %v3126_v24  ;;  %v3127_v11 = vunpack.i.l.bf16 %v3126_v24  ;;  %2815 = vmatpush3.bf16.msra.mxu0 %v2814_v15  ;;  %2512 = vmatprep.mubr.msk.f32.mxu0 %vm3395_vm0, %v3396_v22 }
  0xb2   :  { %2816 = vmatprep.subr.bf16.mxu0 %v3393_v0  ;;  %v1104_v49 = vsel %vm1097_vm6, %v3132_v40, %v3133_v39 }
  0xb3   :  { %v2729_v28 = vpack.c.bf16 %v3128_v25, %v3127_v11  ;;  %v3141_v29 = vpop.permute.xlu1 %3140 }
  0xb4   :  { %v3143_v36 = vunpack.i.h.bf16 %v3141_v29  ;;  %v3142_v37 = vunpack.i.l.bf16 %v3141_v29  ;;  %v3136_v38 = vpop.permute.xlu0 %3135  ;;  %2513 = vmatmul.mubr.msk.f32.gmra.mrb[2].mxu0 %vm81_vm5, %v863_v18 }
  0xb5   :  { %v3138_v41 = vunpack.i.h.bf16 %v3136_v38  ;;  %v3137_v42 = vunpack.i.l.bf16 %v3136_v38  ;;  %2818 = vmatpush3.bf16.msra.mxu0 %v2817_v27  ;;  %2730 = vmatpush3.bf16.msra.mxu1 %v2729_v28 }
  0xb6   :  { %v2732_v44 = vpack.c.bf16 %v3143_v36, %v3142_v37  ;;  %2515 = vmatprep.mubr.msk.f32.mxu0 %vm3395_vm0, %v3396_v22  ;;  %2819 = vmatprep.subr.bf16.mxu0 %v3393_v0  ;;  %v1062_v36 = vld [vmem:[#allocation2 + $0x128] sm:$0xff] }
  0xb7   :  { %v1105_v46 = vsel %vm1097_vm6, %v3137_v42, %v3138_v41  ;;  %v3151_v47 = vpop.permute.xlu1 %3150  ;;  %2731 = vmatprep.subr.bf16.mxu1 %v3393_v0  ;;  %v49_v37 = vld [vmem:[#allocation2 + $0x48] sm:$0x1f]  ;;  %v1063_v42 = vld [vmem:[#allocation2 + $0x130] sm:$0xff] }
  0xb8   :  { %v3146_v48 = vpop.permute.xlu0 %3145  ;;  %2516 = vmatmul.mubr.msk.f32.gmra.mrb[4].mxu0 %vm81_vm5, %v864_v43  ;;  %v2823_v52 = vpack.c.bf16 %v1105_v46, %v1104_v49  ;;  %v3153_v53 = vunpack.i.h.bf16 %v3151_v47  ;;  %v3152_v54 = vunpack.i.l.bf16 %v3151_v47  ;;  %v31_v43 = vld [vmem:[#allocation2] sm:$0xff] }
  0xb9   :  { %2821 = vmatpush3.bf16.msra.mxu0 %v2820_v45  ;;  %2734 = vmatpush3.bf16.msk.msra.mxu1 %vm3646_vm4, %v2732_v44  ;;  %v3148_v55 = vunpack.i.h.bf16 %v3146_v48  ;;  %v3147_v56 = vunpack.i.l.bf16 %v3146_v48 }
  0xba   :  { %2518 = vmatprep.mubr.msk.f32.mxu0 %vm3395_vm0, %v3396_v22  ;;  %2822 = vmatprep.subr.bf16.mxu0 %v3393_v0  ;;  %v1265_v62 = vsel %vm1263_vm7, %v3152_v54, %v3153_v53 }
  0xbb   :  { %v3161_v57 = vpop.permute.xlu1 %3160  ;;  %2735 = vmatprep.subr.bf16.mxu1 %v3393_v0  ;;  %v1264_v63 = vsel %vm1263_vm7, %v3147_v56, %v3148_v55 }
  0xbc   :  { %v3156_v59 = vpop.permute.xlu0 %3155  ;;  %2519 = vmatmul.mubr.msk.f32.gmra.mrb[6].mxu0 %vm81_vm5, %v865_v50  ;;  %2324 = vmatmul.mubr.msk.f32.vlgmr.msra.gmra.mrb[0].mxu1 %vm81_vm5, %v45_v51  ;;  %v3163_v12 = vunpack.i.h.bf16 %v3161_v57  ;;  %v3162_v13 = vunpack.i.l.bf16 %v3161_v57  ;;  %v1064_v51 = vld [vmem:[#allocation2 + $0x138] sm:$0x1f] }
  0xbd   :  { %2825 = vmatpush3.bf16.msk.msra.mxu0 %vm3646_vm4, %v2823_v52  ;;  %2521 = vmatprep.mubr.msk.f32.mxu0 %vm3395_vm0, %v3396_v22  ;;  %v3158_v14 = vunpack.i.h.bf16 %v3156_v59  ;;  %v3157_v4 = vunpack.i.l.bf16 %v3156_v59  ;;  %v32_v52 = vld [vmem:[#allocation2 + $0x8] sm:$0xff] }
  0xbe   :  { %2326 = vmatprep.mubr.msk.f32.mxu1 %vm3395_vm0, %v3396_v22  ;;  %2737 = vmatpush3.bf16.msra.mxu1 %v2736_v31  ;;  %v2827_v31 = vpack.c.bf16 %v1265_v62, %v1264_v63  ;;  %v1267_v23 = vsel %vm1263_vm7, %v3162_v13, %v3163_v12  ;;  %v33_v62 = vld [vmem:[#allocation2 + $0x10] sm:$0xff] }
  0xbf   :  { %v3171_v8 = vpop.permute.xlu1 %3170  ;;  %2826 = vmatprep.subr.bf16.mxu0 %v3393_v0  ;;  %2738 = vmatprep.subr.bf16.mxu1 %v3393_v0  ;;  %v1266_v24 = vsel %vm1263_vm7, %v3157_v4, %v3158_v14 }
  0xc0   :  { %v3166_v15 = vpop.permute.xlu0 %3165  ;;  %2522 = vmatmul.mubr.msk.f32.gmra.mrb[8].mxu0 %vm81_vm5, %v866_v60  ;;  %2327 = vmatmul.mubr.msk.f32.gmra.mrb[2].mxu1 %vm81_vm5, %v46_v61  ;;  %v3173_v16 = vunpack.i.h.bf16 %v3171_v8  ;;  %v3172_v17 = vunpack.i.l.bf16 %v3171_v8  ;;  %v1226_v61 = vld [vmem:[#allocation2 + $0x140] sm:$0xff] }
  0xc1   :  { %2540 = vmatprep.mubr.msk.f32.mxu0 %vm3395_vm0, %v3396_v22  ;;  %2329 = vmatprep.mubr.msk.f32.mxu1 %vm3395_vm0, %v3396_v22  ;;  %v3168_v19 = vunpack.i.h.bf16 %v3166_v15  ;;  %v3167_v20 = vunpack.i.l.bf16 %v3166_v15 }
  0xc2   :  { %2740 = vmatpush3.bf16.msra.mxu1 %v2739_v32  ;;  %v2830_v32 = vpack.c.bf16 %v1267_v23, %v1266_v24  ;;  %v1269_v11 = vsel %vm1263_vm7, %v3172_v17, %v3173_v16 }
  0xc3   :  { %v3181_v21 = vpop.permute.xlu1 %3180  ;;  %2741 = vmatprep.subr.bf16.mxu1 %v3393_v0  ;;  %v1268_v18 = vsel %vm1263_vm7, %v3167_v20, %v3168_v19  ;;  %v1227_v19 = vld [vmem:[#allocation2 + $0x148] sm:$0xff]  ;;  %v34_v20 = vld [vmem:[#allocation2 + $0x18] sm:$0xff] }
  0xc4   :  { %v3176_v25 = vpop.permute.xlu0 %3175  ;;  %2541 = vmatmul.mubr.msk.f32.vlgmr.msra.gmra.mrb[0].mxu0 %vm81_vm5, %v1060_v3  ;;  %2330 = vmatmul.mubr.msk.f32.gmra.mrb[4].mxu1 %vm81_vm5, %v47_v5  ;;  %v3183_v27 = vunpack.i.h.bf16 %v3181_v21  ;;  %v3182_v28 = vunpack.i.l.bf16 %v3181_v21  ;;  %v2833_v1 = vpack.c.bf16 %v1269_v11, %v1268_v18 }
  0xc5   :  { %2828 = vmatpush3.bf16.msra.mxu0 %v2827_v31  ;;  %2543 = vmatprep.mubr.msk.f32.mxu0 %vm3395_vm0, %v3396_v22  ;;  %v3178_v29 = vunpack.i.h.bf16 %v3176_v25  ;;  %v3177_v30 = vunpack.i.l.bf16 %v3176_v25 }
  0xc6   :  { %2829 = vmatprep.subr.bf16.mxu0 %v3393_v0  ;;  %2332 = vmatprep.mubr.msk.f32.mxu1 %vm3395_vm0, %v3396_v22 }
  0xc7   :  { %v3191_v26 = vpop.permute.xlu1 %3190  ;;  %2743 = vmatpush3.bf16.msra.mxu1 %v2742_v33  ;;  %v1271_v33 = vsel %vm1263_vm7, %v3182_v28, %v3183_v27  ;;  %v1270_v38 = vsel %vm1263_vm7, %v3177_v30, %v3178_v29  ;;  %v1228_v28 = vld [vmem:[#allocation2 + $0x150] sm:$0xff]  ;;  %v35_v29 = vld [vmem:[#allocation2 + $0x20] sm:$0x1f] }
  0xc8   :  { %v3186_v35 = vpop.permute.xlu0 %3185  ;;  %2544 = vmatmul.mubr.msk.f32.gmra.mrb[2].mxu0 %vm81_vm5, %v1061_v9  ;;  %2333 = vmatmul.mubr.msk.f32.gmra.mrb[6].mxu1 %vm81_vm5, %v48_v10  ;;  %v2836_v44 = vpack.c.bf16 %v1271_v33, %v1270_v38  ;;  %v3193_v45 = vunpack.i.h.bf16 %v3191_v26  ;;  %v3192_v46 = vunpack.i.l.bf16 %v3191_v26  ;;  %v1229_v38 = vld [vmem:[#allocation2 + $0x158] sm:$0xff] }
  0xc9   :  { %2831 = vmatpush3.bf16.msra.mxu0 %v2830_v32  ;;  %2546 = vmatprep.mubr.msk.f32.mxu0 %vm3395_vm0, %v3396_v22  ;;  %v3188_v6 = vunpack.i.h.bf16 %v3186_v35  ;;  %v3187_v7 = vunpack.i.l.bf16 %v3186_v35 }
  0xca   :  { %2832 = vmatprep.subr.bf16.mxu0 %v3393_v0  ;;  %2335 = vmatprep.mubr.msk.f32.mxu1 %vm3395_vm0, %v3396_v22  ;;  %v1431_v57 = vsel %vm1429_vm8, %v3192_v46, %v3193_v45 }
  0xcb   :  { %v3758_v2 = vpop.permute.xlu1 %3200  ;;  %2744 = vmatprep.subr.bf16.mxu1 %v3393_v0  ;;  %v1430_v59 = vsel %vm1429_vm8, %v3187_v7, %v3188_v6  ;;  %v1230_v7 = vld [vmem:[#allocation2 + $0x160] sm:$0x1f] }
  0xcc   :  { %v3196_v39 = vpop.permute.xlu0 %3195  ;;  %2547 = vmatmul.mubr.msk.f32.gmra.mrb[4].mxu0 %vm81_vm5, %v1062_v36  ;;  %2336 = vmatmul.mubr.msk.f32.gmra.mrb[8].mxu1 %vm81_vm5, %v49_v37  ;;  %v3203_v63 = vunpack.i.h.bf16 %v3758_v2  ;;  %v3202_v8 = vunpack.i.l.bf16 %v3758_v2  ;;  %v2840_v12 = vpack.c.bf16 %v1431_v57, %v1430_v59  ;;  %v1392_v59 = vld [vmem:[#allocation2 + $0x168] sm:$0xff] }
  0xcd   :  { %v3198_v40 = vunpack.i.h.bf16 %v3196_v39  ;;  %v3197_v41 = vunpack.i.l.bf16 %v3196_v39  ;;  %2834 = vmatpush3.bf16.msra.mxu0 %v2833_v1  ;;  %2747 = vmatpush3.bf16.msk.msra.mxu1 %vm3646_vm4, %v2745_v34  ;;  %v298_v39 = vld [vmem:[#allocation2 + $0x50] sm:$0xff] }
  0xce   :  { %2549 = vmatprep.mubr.msk.f32.mxu0 %vm3395_vm0, %v3396_v22  ;;  %2835 = vmatprep.subr.bf16.mxu0 %v3393_v0  ;;  %v1432_v21 = vsel %vm1429_vm8, %v3202_v8, %v3203_v63 }
  0xcf   :  { %v2749_v47 = vpack.c.bf16 %v3198_v40, %v3197_v41  ;;  %v3211_v48 = vpop.permute.xlu1 %3210  ;;  %2354 = vmatprep.mubr.msk.f32.mxu1 %vm3395_vm0, %v3396_v22  ;;  %2748 = vmatprep.subr.bf16.mxu1 %v3393_v0 }
  0xd0   :  { %v3213_v34 = vunpack.i.h.bf16 %v3211_v48  ;;  %v3212_v49 = vunpack.i.l.bf16 %v3211_v48  ;;  %v3206_v50 = vpop.permute.xlu0 %3205  ;;  %2550 = vmatmul.mubr.msk.f32.gmra.mrb[6].mxu0 %vm81_vm5, %v1063_v42  ;;  %2355 = vmatmul.mubr.msk.f32.vlgmr.msra.gmra.mrb[0].mxu1 %vm81_vm5, %v31_v43 }
  0xd1   :  { %2838 = vmatpush3.bf16.msk.msra.mxu0 %vm3646_vm4, %v2836_v44  ;;  %2750 = vmatpush3.bf16.msra.mxu1 %v2749_v47  ;;  %v3208_v54 = vunpack.i.h.bf16 %v3206_v50  ;;  %v3207_v55 = vunpack.i.l.bf16 %v3206_v50 }
  0xd2   :  { %v2752_v53 = vpack.c.bf16 %v3213_v34, %v3212_v49  ;;  %2552 = vmatprep.mubr.msk.f32.mxu0 %vm3395_vm0, %v3396_v22  ;;  %2751 = vmatprep.subr.bf16.mxu1 %v3393_v0  ;;  %v299_v34 = vld [vmem:[#allocation2 + $0x58] sm:$0xff] }
  0xd3   :  { %v3221_v56 = vpop.permute.xlu1 %3220  ;;  %2839 = vmatprep.subr.bf16.mxu0 %v3393_v0  ;;  %2357 = vmatprep.mubr.msk.f32.mxu1 %vm3395_vm0, %v3396_v22  ;;  %v1433_v13 = vsel %vm1429_vm8, %v3207_v55, %v3208_v54 }
  0xd4   :  { %v3216_v60 = vpop.permute.xlu0 %3215  ;;  %2553 = vmatmul.mubr.msk.f32.gmra.mrb[8].mxu0 %vm81_vm5, %v1064_v51  ;;  %2358 = vmatmul.mubr.msk.f32.gmra.mrb[2].mxu1 %vm81_vm5, %v32_v52  ;;  %v3223_v4 = vunpack.i.h.bf16 %v3221_v56  ;;  %v3222_v15 = vunpack.i.l.bf16 %v3221_v56  ;;  %v2843_v23 = vpack.c.bf16 %v1433_v13, %v1432_v21 }
  0xd5   :  { %2753 = vmatpush3.bf16.msra.mxu1 %v2752_v53  ;;  %2571 = vmatprep.mubr.msk.f32.mxu0 %vm3395_vm0, %v3396_v22  ;;  %v3218_v3 = vunpack.i.h.bf16 %v3216_v60  ;;  %v3217_v5 = vunpack.i.l.bf16 %v3216_v60  ;;  %v300_v60 = vld [vmem:[#allocation2 + $0x60] sm:$0xff] }
  0xd6   :  { %2360 = vmatprep.mubr.msk.f32.mxu1 %vm3395_vm0, %v3396_v22  ;;  %2754 = vmatprep.subr.bf16.mxu1 %v3393_v0  ;;  %v1435_v9 = vsel %vm1429_vm8, %v3222_v15, %v3223_v4 }
  0xd7   :  { %v3231_v14 = vpop.permute.xlu1 %3230  ;;  %v1434_v10 = vsel %vm1429_vm8, %v3217_v5, %v3218_v3 }
  0xd8   :  { %v3226_v31 = vpop.permute.xlu0 %3225  ;;  %2572 = vmatmul.mubr.msk.f32.vlgmr.msra.gmra.mrb[0].mxu0 %vm81_vm5, %v1226_v61  ;;  %2361 = vmatmul.mubr.msk.f32.gmra.mrb[4].mxu1 %vm81_vm5, %v33_v62  ;;  %v3233_v30 = vunpack.i.h.bf16 %v3231_v14  ;;  %v3232_v35 = vunpack.i.l.bf16 %v3231_v14  ;;  %v2846_v37 = vpack.c.bf16 %v1435_v9, %v1434_v10  ;;  %v1394_v10 = vld [vmem:[#allocation2 + $0x178] sm:$0xff] }
  0xd9   :  { %v3228_v16 = vunpack.i.h.bf16 %v3226_v31  ;;  %v3227_v17 = vunpack.i.l.bf16 %v3226_v31  ;;  %2841 = vmatpush3.bf16.msra.mxu0 %v2840_v12  ;;  %2574 = vmatprep.mubr.msk.f32.mxu0 %vm3395_vm0, %v3396_v22  ;;  %v1393_v31 = vld [vmem:[#allocation2 + $0x170] sm:$0xff] }
  0xda   :  { %2842 = vmatprep.subr.bf16.mxu0 %v3393_v0  ;;  %2363 = vmatprep.mubr.msk.f32.mxu1 %vm3395_vm0, %v3396_v22  ;;  %v1436_v40 = vsel %vm1429_vm8, %v3232_v35, %v3233_v30 }
  0xdb   :  { %v2755_v24 = vpack.c.bf16 %v3228_v16, %v3227_v17  ;;  %v3241_v25 = vpop.permute.xlu1 %3240  ;;  %v301_v16 = vld [vmem:[#allocation2 + $0x68] sm:$0xff] }
  0xdc   :  { %v3243_v32 = vunpack.i.h.bf16 %v3241_v25  ;;  %v3242_v11 = vunpack.i.l.bf16 %v3241_v25  ;;  %v3236_v18 = vpop.permute.xlu0 %3235  ;;  %2575 = vmatmul.mubr.msk.f32.gmra.mrb[2].mxu0 %vm81_vm5, %v1227_v19  ;;  %2364 = vmatmul.mubr.msk.f32.gmra.mrb[6].mxu1 %vm81_vm5, %v34_v20 }
  0xdd   :  { %v3238_v26 = vunpack.i.h.bf16 %v3236_v18  ;;  %v3237_v27 = vunpack.i.l.bf16 %v3236_v18  ;;  %2844 = vmatpush3.bf16.msra.mxu0 %v2843_v23  ;;  %2756 = vmatpush3.bf16.msra.mxu1 %v2755_v24 }
  0xde   :  { %v2758_v36 = vpack.c.bf16 %v3243_v32, %v3242_v11  ;;  %2577 = vmatprep.mubr.msk.f32.mxu0 %vm3395_vm0, %v3396_v22  ;;  %2845 = vmatprep.subr.bf16.mxu0 %v3393_v0  ;;  %v302_v32 = vld [vmem:[#allocation2 + $0x70] sm:$0x1f] }
  0xdf   :  { %v3251_v1 = vpop.permute.xlu1 %3250  ;;  %2757 = vmatprep.subr.bf16.mxu1 %v3393_v0  ;;  %2366 = vmatprep.mubr.msk.f32.mxu1 %vm3395_vm0, %v3396_v22  ;;  %v1437_v2 = vsel %vm1429_vm8, %v3237_v27, %v3238_v26 }
  0xe0   :  { %v3246_v33 = vpop.permute.xlu0 %3245  ;;  %2578 = vmatmul.mubr.msk.f32.gmra.mrb[4].mxu0 %vm81_vm5, %v1228_v28  ;;  %2367 = vmatmul.mubr.msk.f32.gmra.mrb[8].mxu1 %vm81_vm5, %v35_v29  ;;  %v2849_v41 = vpack.c.bf16 %v1437_v2, %v1436_v40  ;;  %v3253_v43 = vunpack.i.h.bf16 %v3251_v1  ;;  %v3252_v44 = vunpack.i.l.bf16 %v3251_v1  ;;  %v1395_v1 = vld [vmem:[#allocation2 + $0x180] sm:$0xff] }
  0xe1   :  { %2847 = vmatpush3.bf16.msra.mxu0 %v2846_v37  ;;  %2760 = vmatpush3.bf16.msk.msra.mxu1 %vm3646_vm4, %v2758_v36  ;;  %v3248_v45 = vunpack.i.h.bf16 %v3246_v33  ;;  %v3247_v46 = vunpack.i.l.bf16 %v3246_v33 }
  0xe2   :  { %2580 = vmatprep.mubr.msk.f32.mxu0 %vm3395_vm0, %v3396_v22  ;;  %2848 = vmatprep.subr.bf16.mxu0 %v3393_v0  ;;  %v1597_v51 = vsel %vm1595_vm9, %v3252_v44, %v3253_v43 }
  0xe3   :  { %v3261_v42 = vpop.permute.xlu1 %3260  ;;  %2385 = vmatprep.mubr.msk.f32.mxu1 %vm3395_vm0, %v3396_v22  ;;  %2761 = vmatprep.subr.bf16.mxu1 %v3393_v0  ;;  %v1596_v52 = vsel %vm1595_vm9, %v3247_v46, %v3248_v45  ;;  %v1396_v46 = vld [vmem:[#allocation2 + $0x188] sm:$0x1f] }
  0xe4   :  { %v3256_v47 = vpop.permute.xlu0 %3255  ;;  %2581 = vmatmul.mubr.msk.f32.gmra.mrb[6].mxu0 %vm81_vm5, %v1229_v38  ;;  %2386 = vmatmul.mubr.msk.f32.vlgmr.msra.gmra.mrb[0].mxu1 %vm81_vm5, %v298_v39  ;;  %v3263_v61 = vunpack.i.h.bf16 %v3261_v42  ;;  %v3262_v62 = vunpack.i.l.bf16 %v3261_v42  ;;  %v2853_v8 = vpack.c.bf16 %v1597_v51, %v1596_v52  ;;  %v1558_v51 = vld [vmem:[#allocation2 + $0x190] sm:$0xff]  ;;  %v440_v52 = vld [vmem:[#allocation2 + $0x80] sm:$0xff] }
  0xe5   :  { %v3258_v48 = vunpack.i.h.bf16 %v3256_v47  ;;  %v3257_v6 = vunpack.i.l.bf16 %v3256_v47  ;;  %2851 = vmatpush3.bf16.msk.msra.mxu0 %vm3646_vm4, %v2849_v41  ;;  %2583 = vmatprep.mubr.msk.f32.mxu0 %vm3395_vm0, %v3396_v22  ;;  %v439_v47 = vld [vmem:[#allocation2 + $0x78] sm:$0xff] }
  0xe6   :  { %2852 = vmatprep.subr.bf16.mxu0 %v3393_v0  ;;  %2388 = vmatprep.mubr.msk.f32.mxu1 %vm3395_vm0, %v3396_v22  ;;  %v1598_v17 = vsel %vm1595_vm9, %v3262_v62, %v3263_v61 }
  0xe7   :  { %v2762_v49 = vpack.c.bf16 %v3258_v48, %v3257_v6  ;;  %v3271_v50 = vpop.permute.xlu1 %3270 }
  0xe8   :  { %v3273_v53 = vunpack.i.h.bf16 %v3271_v50  ;;  %v3272_v54 = vunpack.i.l.bf16 %v3271_v50  ;;  %v3266_v55 = vpop.permute.xlu0 %3265  ;;  %2584 = vmatmul.mubr.msk.f32.gmra.mrb[8].mxu0 %vm81_vm5, %v1230_v7  ;;  %2389 = vmatmul.mubr.msk.f32.gmra.mrb[2].mxu1 %vm81_vm5, %v299_v34 }
  0xe9   :  { %v3268_v56 = vunpack.i.h.bf16 %v3266_v55  ;;  %v3267_v57 = vunpack.i.l.bf16 %v3266_v55  ;;  %2763 = vmatpush3.bf16.msra.mxu1 %v2762_v49  ;;  %2602 = vmatprep.mubr.msk.f32.mxu0 %vm3395_vm0, %v3396_v22 }
  0xea   :  { %v2765_v63 = vpack.c.bf16 %v3273_v53, %v3272_v54  ;;  %2764 = vmatprep.subr.bf16.mxu1 %v3393_v0  ;;  %2391 = vmatprep.mubr.msk.f32.mxu1 %vm3395_vm0, %v3396_v22 }
  0xeb   :  { %v3281_v12 = vpop.permute.xlu1 %3280  ;;  %v1599_v13 = vsel %vm1595_vm9, %v3267_v57, %v3268_v56 }
  0xec   :  { %v3283_v14 = vunpack.i.h.bf16 %v3281_v12  ;;  %v3282_v4 = vunpack.i.l.bf16 %v3281_v12  ;;  %v3276_v15 = vpop.permute.xlu0 %3275  ;;  %2603 = vmatmul.mubr.msk.f32.vlgmr.msra.gmra.mrb[0].mxu0 %vm81_vm5, %v1392_v59  ;;  %2392 = vmatmul.mubr.msk.f32.gmra.mrb[4].mxu1 %vm81_vm5, %v300_v60  ;;  %v2856_v19 = vpack.c.bf16 %v1599_v13, %v1598_v17  ;;  %v441_v12 = vld [vmem:[#allocation2 + $0x88] sm:$0xff] }
  0xed   :  { %v3278_v3 = vunpack.i.h.bf16 %v3276_v15  ;;  %v3277_v5 = vunpack.i.l.bf16 %v3276_v15  ;;  %2854 = vmatpush3.bf16.msra.mxu0 %v2853_v8  ;;  %2766 = vmatpush3.bf16.msra.mxu1 %v2765_v63  ;;  %v1559_v8 = vld [vmem:[#allocation2 + $0x198] sm:$0xff] }
  0xee   :  { %2605 = vmatprep.mubr.msk.f32.mxu0 %vm3395_vm0, %v3396_v22  ;;  %2855 = vmatprep.subr.bf16.mxu0 %v3393_v0  ;;  %v1601_v21 = vsel %vm1595_vm9, %v3282_v4, %v3283_v14 }
  0xef   :  { %v3291_v20 = vpop.permute.xlu1 %3290  ;;  %2767 = vmatprep.subr.bf16.mxu1 %v3393_v0  ;;  %2394 = vmatprep.mubr.msk.f32.mxu1 %vm3395_vm0, %v3396_v22  ;;  %v1600_v23 = vsel %vm1595_vm9, %v3277_v5, %v3278_v3 }
  0xf0   :  { %v3286_v24 = vpop.permute.xlu0 %3285  ;;  %2606 = vmatmul.mubr.msk.f32.gmra.mrb[2].mxu0 %vm81_vm5, %v1393_v31  ;;  %2395 = vmatmul.mubr.msk.f32.gmra.mrb[6].mxu1 %vm81_vm5, %v301_v16  ;;  %v2859_v11 = vpack.c.bf16 %v1601_v21, %v1600_v23  ;;  %v3293_v18 = vunpack.i.h.bf16 %v3291_v20  ;;  %v3292_v26 = vunpack.i.l.bf16 %v3291_v20  ;;  %v1560_v20 = vld [vmem:[#allocation2 + $0x1a0] sm:$0xff]  ;;  %v442_v21 = vld [vmem:[#allocation2 + $0x90] sm:$0xff] }
  0xf1   :  { %v3288_v25 = vunpack.i.h.bf16 %v3286_v24  ;;  %v3287_v9 = vunpack.i.l.bf16 %v3286_v24  ;;  %2857 = vmatpush3.bf16.msra.mxu0 %v2856_v19  ;;  %2608 = vmatprep.mubr.msk.f32.mxu0 %vm3395_vm0, %v3396_v22 }
  0xf2   :  { %2858 = vmatprep.subr.bf16.mxu0 %v3393_v0  ;;  %2397 = vmatprep.mubr.msk.f32.mxu1 %vm3395_vm0, %v3396_v22  ;;  %v1602_v33 = vsel %vm1595_vm9, %v3292_v26, %v3293_v18  ;;  %v1561_v18 = vld [vmem:[#allocation2 + $0x1a8] sm:$0xff]  ;;  %v443_v26 = vld [vmem:[#allocation2 + $0x98] sm:$0x1f] }
  0xf3   :  { %v2768_v27 = vpack.c.bf16 %v3288_v25, %v3287_v9  ;;  %v3301_v28 = vpop.permute.xlu1 %3300 }
  0xf4   :  { %v3303_v29 = vunpack.i.h.bf16 %v3301_v28  ;;  %v3302_v30 = vunpack.i.l.bf16 %v3301_v28  ;;  %v3296_v35 = vpop.permute.xlu0 %3295  ;;  %2609 = vmatmul.mubr.msk.f32.gmra.mrb[4].mxu0 %vm81_vm5, %v1394_v10  ;;  %2398 = vmatmul.mubr.msk.f32.gmra.mrb[8].mxu1 %vm81_vm5, %v302_v32 }
  0xf5   :  { %v3298_v36 = vunpack.i.h.bf16 %v3296_v35  ;;  %v3297_v37 = vunpack.i.l.bf16 %v3296_v35  ;;  %2860 = vmatpush3.bf16.msra.mxu0 %v2859_v11  ;;  %2769 = vmatpush3.bf16.msra.mxu1 %v2768_v27 }
  0xf6   :  { %v2771_v2 = vpack.c.bf16 %v3303_v29, %v3302_v30  ;;  %2611 = vmatprep.mubr.msk.f32.mxu0 %vm3395_vm0, %v3396_v22  ;;  %2770 = vmatprep.subr.bf16.mxu1 %v3393_v0 }
  0xf7   :  { %v1603_v38 = vsel %vm1595_vm9, %v3297_v37, %v3298_v36  ;;  %v3311_v39 = vpop.permute.xlu1 %3310  ;;  %2861 = vmatprep.subr.bf16.mxu0 %v3393_v0  ;;  %2416 = vmatprep.mubr.msk.f32.mxu1 %vm3395_vm0, %v3396_v22 }
  0xf8   :  { %v2862_v40 = vpack.c.bf16 %v1603_v38, %v1602_v33  ;;  %v3313_v41 = vunpack.i.h.bf16 %v3311_v39  ;;  %v3312_v42 = vunpack.i.l.bf16 %v3311_v39  ;;  %v3306_v43 = vpop.permute.xlu0 %3305  ;;  %2612 = vmatmul.mubr.msk.f32.gmra.mrb[6].mxu0 %vm81_vm5, %v1395_v1  ;;  %v1562_v33 = vld [vmem:[#allocation2 + $0x1b0] sm:$0x1f] }
  0xf9   :  { %v3308_v44 = vunpack.i.h.bf16 %v3306_v43  ;;  %v3307_v45 = vunpack.i.l.bf16 %v3306_v43  ;;  %2773 = vmatpush3.bf16.msk.msra.mxu1 %vm3646_vm4, %v2771_v2  ;;  %2614 = vmatprep.mubr.msk.f32.mxu0 %vm3395_vm0, %v3396_v22 }
  0xfa   :  { %2864 = vmatpush3.bf16.msk.msra.mxu0 %vm3646_vm4, %v2862_v40  ;;  %2774 = vmatprep.subr.bf16.mxu1 %v3393_v0  ;;  %v1763_v6 = vsel %vm1761_vm10, %v3312_v42, %v3313_v41  ;;  %v1889_v41 = vld [vmem:[%s4063_s2] sm:$0xff]  ;;  %v1890_v42 = vld [vmem:[%s4063_s2 + $0x8] sm:$0xff] }
  0xfb   :  { %v3321_v48 = vpop.permute.xlu1 %3320  ;;  %2865 = vmatprep.subr.bf16.mxu0 %v3393_v0  ;;  %v1762_v7 = vsel %vm1761_vm10, %v3307_v45, %v3308_v44  ;;  %v580_v44 = vld [vmem:[#allocation2 + $0xa0] sm:$0xff]  ;;  %v1724_v45 = vld [vmem:[#allocation2 + $0x1b8] sm:$0xff] }
  0xfc   :  { %v3316_v34 = vpop.permute.xlu0 %3315  ;;  %2615 = vmatmul.mubr.msk.f32.gmra.mrb[8].mxu0 %vm81_vm5, %v1396_v46  ;;  %2417 = vmatmul.mubr.msk.f32.vlgmr.msra.gmra.mrb[0].mxu1 %vm81_vm5, %v439_v47  ;;  %v2866_v53 = vpack.c.bf16 %v1763_v6, %v1762_v7  ;;  %v3323_v54 = vunpack.i.h.bf16 %v3321_v48  ;;  %v3322_v55 = vunpack.i.l.bf16 %v3321_v48  ;;  %v2879_v46 = vpack.c.bf16 %v1890_v42, %v1889_v41  ;;  %v1891_v47 = vld [vmem:[%s4063_s2 + $0x10] sm:$0xff]  ;;  %v1892_v48 = vld [vmem:[%s4063_s2 + $0x18] sm:$0xff]  ;;  %v581_v6 = vld [vmem:[#allocation2 + $0xa8] sm:$0xff] }
  0xfd   :  { %v3318_v49 = vunpack.i.h.bf16 %v3316_v34  ;;  %v3317_v50 = vunpack.i.l.bf16 %v3316_v34  ;;  %2633 = vmatprep.mubr.msk.f32.mxu0 %vm3395_vm0, %v3396_v22  ;;  %2419 = vmatprep.mubr.msk.f32.mxu1 %vm3395_vm0, %v3396_v22  ;;  %v1725_v7 = vld [vmem:[#allocation2 + $0x1c0] sm:$0xff]  ;;  %v2882_v34 = vpack.c.bf16 %v1892_v48, %v1891_v47 }
  0xfe   :  { %v1764_v14 = vsel %vm1761_vm10, %v3322_v55, %v3323_v54  ;;  %v1895_v54 = vld [vmem:[%s4063_s2 + $0x30] sm:$0xff]  ;;  %v1896_v55 = vld [vmem:[%s4063_s2 + $0x38] sm:$0xff] }
  0xff   :  { %v2775_v56 = vpack.c.bf16 %v3318_v49, %v3317_v50  ;;  %v3331_v57 = vpop.permute.xlu1 %3330  ;;  %v1893_v49 = vld [vmem:[%s4063_s2 + $0x20] sm:$0xff]  ;;  %v1894_v50 = vld [vmem:[%s4063_s2 + $0x28] sm:$0xff] }
 0x100   :  { %v3333_v59 = vunpack.i.h.bf16 %v3331_v57  ;;  %v3332_v60 = vunpack.i.l.bf16 %v3331_v57  ;;  %v3326_v61 = vpop.permute.xlu0 %3325  ;;  %2634 = vmatmul.mubr.msk.f32.vlgmr.msra.gmra.mrb[0].mxu0 %vm81_vm5, %v1558_v51  ;;  %2420 = vmatmul.mubr.msk.f32.gmra.mrb[2].mxu1 %vm81_vm5, %v440_v52  ;;  %v582_v51 = vld [vmem:[#allocation2 + $0xb0] sm:$0xff]  ;;  %v1726_v52 = vld [vmem:[#allocation2 + $0x1c8] sm:$0xff] }
 0x101   :  { %v3328_v62 = vunpack.i.h.bf16 %v3326_v61  ;;  %v3327_v63 = vunpack.i.l.bf16 %v3326_v61  ;;  %2867 = vmatpush3.bf16.msra.mxu0 %v2866_v53  ;;  %2776 = vmatpush3.bf16.msra.mxu1 %v2775_v56  ;;  %v2885_v53 = vpack.c.bf16 %v1894_v50, %v1893_v49  ;;  %v583_v56 = vld [vmem:[#allocation2 + $0xb8] sm:$0xff]  ;;  %v1727_v57 = vld [vmem:[#allocation2 + $0x1d0] sm:$0xff]  ;;  %v1898_v61 = vld [vmem:[%s4063_s2 + $0x48] sm:$0xff] }
 0x102   :  { %v2778_v13 = vpack.c.bf16 %v3333_v59, %v3332_v60  ;;  %2636 = vmatprep.mubr.msk.f32.mxu0 %vm3395_vm0, %v3396_v22  ;;  %2777 = vmatprep.subr.bf16.mxu1 %v3393_v0  ;;  %v2888_v59 = vpack.c.bf16 %v1896_v55, %v1895_v54  ;;  %v1897_v60 = vld [vmem:[%s4063_s2 + $0x40] sm:$0xff] }
 0x103   :  { %v1765_v4 = vsel %vm1761_vm10, %v3327_v63, %v3328_v62  ;;  %v3341_v15 = vpop.permute.xlu1 %3340  ;;  %2868 = vmatprep.subr.bf16.mxu0 %v3393_v0  ;;  %2422 = vmatprep.mubr.msk.f32.mxu1 %vm3395_vm0, %v3396_v22  ;;  %v584_v62 = vld [vmem:[#allocation2 + $0xc0] sm:$0x1f]  ;;  %v1728_v63 = vld [vmem:[#allocation2 + $0x1d8] sm:$0x1f] }
 0x104   :  { %v2869_v3 = vpack.c.bf16 %v1765_v4, %v1764_v14  ;;  %v3343_v5 = vunpack.i.h.bf16 %v3341_v15  ;;  %v3342_v31 = vunpack.i.l.bf16 %v3341_v15  ;;  %v3336_v16 = vpop.permute.xlu0 %3335  ;;  %2637 = vmatmul.mubr.msk.f32.gmra.mrb[2].mxu0 %vm81_vm5, %v1559_v8  ;;  %2423 = vmatmul.mubr.msk.f32.gmra.mrb[4].mxu1 %vm81_vm5, %v441_v12  ;;  %v2891_v8 = vpack.c.bf16 %v1898_v61, %v1897_v60  ;;  %v1899_v12 = vld [vmem:[%s4063_s2 + $0x50] sm:$0xff]  ;;  %v1901_v4 = vld [vmem:[%s4063_s2 + $0x60] sm:$0xff]  ;;  %v1902_v15 = vld [vmem:[%s4063_s2 + $0x68] sm:$0xf] }
 0x105   :  { %v3338_v17 = vunpack.i.h.bf16 %v3336_v16  ;;  %v3337_v19 = vunpack.i.l.bf16 %v3336_v16  ;;  %2779 = vmatpush3.bf16.msra.mxu1 %v2778_v13  ;;  %2639 = vmatprep.mubr.msk.f32.mxu0 %vm3395_vm0, %v3396_v22  ;;  %v1900_v13 = vld [vmem:[%s4063_s2 + $0x58] sm:$0xff]  ;;  %v1905_v16 = vld [vmem:[%s4064_s3 + $0x10] sm:$0xff] }
 0x106   :  { %v1767_v23 = vsel %vm1761_vm10, %v3342_v31, %v3343_v5  ;;  %2870 = vmatpush3.bf16.msra.mxu0 %v2869_v3  ;;  %2425 = vmatprep.mubr.msk.f32.mxu1 %vm3395_vm0, %v3396_v22  ;;  %v2894_v14 = vpack.c.bf16 %v1900_v13, %v1899_v12  ;;  %v2897_v3 = vpack.c.bf16 %v1902_v15, %v1901_v4  ;;  %v1903_v5 = vld [vmem:[%s4064_s3] sm:$0xff]  ;;  %v3408_v31 = vmov 0  }
 0x107   :  { %v1766_v24 = vsel %vm1761_vm10, %v3337_v19, %v3338_v17  ;;  %v3351_v25 = vpop.permute.xlu1 %3350  ;;  %2871 = vmatprep.subr.bf16.mxu0 %v3393_v0  ;;  %2780 = vmatprep.subr.bf16.mxu1 %v3393_v0  ;;  %v1907_v17 = vld [vmem:[%s4064_s3 + $0x20] sm:$0x1f] }
 0x108   :  { %v2872_v9 = vpack.c.bf16 %v1767_v23, %v1766_v24  ;;  %v3346_v10 = vpop.permute.xlu0 %3345  ;;  %2640 = vmatmul.mubr.msk.f32.gmra.mrb[4].mxu0 %vm81_vm5, %v1560_v20  ;;  %2426 = vmatmul.mubr.msk.f32.gmra.mrb[6].mxu1 %vm81_vm5, %v442_v21  ;;  %v3353_v27 = vunpack.i.h.bf16 %v3351_v25  ;;  %v3352_v28 = vunpack.i.l.bf16 %v3351_v25 }
 0x109   :  { %v3348_v32 = vunpack.i.h.bf16 %v3346_v10  ;;  %v3347_v11 = vunpack.i.l.bf16 %v3346_v10  ;;  %2642 = vmatprep.mubr.msk.f32.mxu0 %vm3395_vm0, %v3396_v22  ;;  %2428 = vmatprep.mubr.msk.f32.mxu1 %vm3395_vm0, %v3396_v22 }
 0x10a   :  { %2873 = vmatpush3.bf16.msra.mxu0 %v2872_v9  ;;  %v1768_v39 = vsel %vm1761_vm10, %v3352_v28, %v3353_v27  ;;  %3364 = vset.pattern.permute.xlu0 %v3408_v31 }
 0x10b   :  { %v2781_v29 = vpack.c.bf16 %v3348_v32, %v3347_v11  ;;  %v3361_v30 = vpop.permute.xlu1 %3360  ;;  %2874 = vmatprep.subr.bf16.mxu0 %v3393_v0  ;;  %3365 = vset.pattern.permute.xlu1 %v3408_v31 }
 0x10c   :  { %v3363_v35 = vunpack.i.h.bf16 %v3361_v30  ;;  %v3362_v36 = vunpack.i.l.bf16 %v3361_v30  ;;  %v3356_v37 = vpop.permute.xlu0 %3355  ;;  %2643 = vmatmul.mubr.msk.f32.gmra.mrb[6].mxu0 %vm81_vm5, %v1561_v18  ;;  %2429 = vmatmul.mubr.msk.f32.gmra.mrb[8].mxu1 %vm81_vm5, %v443_v26 }
 0x10d   :  { %v3358_v1 = vunpack.i.h.bf16 %v3356_v37  ;;  %v3357_v2 = vunpack.i.l.bf16 %v3356_v37  ;;  %2782 = vmatpush3.bf16.msra.mxu1 %v2781_v29  ;;  %2645 = vmatprep.mubr.msk.f32.mxu0 %vm3395_vm0, %v3396_v22 }
 0x10e   :  { %v2784_v38 = vpack.c.bf16 %v3363_v35, %v3362_v36  ;;  %2783 = vmatprep.subr.bf16.mxu1 %v3393_v0  ;;  %2447 = vmatprep.mubr.msk.f32.mxu1 %vm3395_vm0, %v3396_v22 }
 0x10f   :  { %v1769_v40 = vsel %vm1761_vm10, %v3357_v2, %v3358_v1  ;;  %1910 = vperm.xlu0 %3364, %v1903_v5  }
 0x110   :  { %v2875_v43 = vpack.c.bf16 %v1769_v40, %v1768_v39  ;;  %2646 = vmatmul.mubr.msk.f32.gmra.mrb[8].mxu0 %vm81_vm5, %v1562_v33 }
 0x111   :  { %2786 = vmatpush3.bf16.msk.msra.mxu1 %vm3646_vm4, %v2784_v38  ;;  %2664 = vmatprep.mubr.msk.f32.mxu0 %vm3395_vm0, %v3396_v22 }
 0x112   :  { %2877 = vmatpush3.bf16.msk.msra.mxu0 %vm3646_vm4, %v2875_v43  ;;  %2878 = vmatprep.subr.bf16.mxu1 %v3393_v0 }
 0x113   :  { %1925 = vperm.xlu0 %3364, %v1906_v58  }
 0x114   :  { %2448 = vmatmul.mubr.msk.f32.vlgmr.msra.gmra.mrb[0].mxu1 %vm81_vm5, %v580_v44 }
 0x115   :  { %2665 = vmatmul.mubr.msk.f32.vlgmr.msra.gmra.mrb[0].mxu0 %vm81_vm5, %v1724_v45  ;;  %2450 = vmatprep.mubr.msk.f32.mxu1 %vm3395_vm0, %v3396_v22 }
 0x116   :  { %2667 = vmatprep.mubr.msk.f32.mxu0 %vm3395_vm0, %v3396_v22  ;;  %2880 = vmatpush3.bf16.msra.mxu1 %v2879_v46 }
 0x117   :  { %2881 = vmatprep.subr.bf16.mxu1 %v3393_v0 }
 0x118   :  { %2451 = vmatmul.mubr.msk.f32.gmra.mrb[2].mxu1 %vm81_vm5, %v581_v6 }
 0x119   :  { %2668 = vmatmul.mubr.msk.f32.gmra.mrb[2].mxu0 %vm81_vm5, %v1725_v7  ;;  %2453 = vmatprep.mubr.msk.f32.mxu1 %vm3395_vm0, %v3396_v22 }
 0x11a   :  { %2670 = vmatprep.mubr.msk.f32.mxu0 %vm3395_vm0, %v3396_v22  ;;  %2883 = vmatpush3.bf16.msra.mxu1 %v2882_v34 }
 0x11b   :  { %2884 = vmatprep.subr.bf16.mxu1 %v3393_v0 }
 0x11c   :  { %2454 = vmatmul.mubr.msk.f32.gmra.mrb[4].mxu1 %vm81_vm5, %v582_v51 }
 0x11d   :  { %2671 = vmatmul.mubr.msk.f32.gmra.mrb[4].mxu0 %vm81_vm5, %v1726_v52  ;;  %2456 = vmatprep.mubr.msk.f32.mxu1 %vm3395_vm0, %v3396_v22 }
 0x11e   :  { %2673 = vmatprep.mubr.msk.f32.mxu0 %vm3395_vm0, %v3396_v22  ;;  %2886 = vmatpush3.bf16.msra.mxu1 %v2885_v53 }
 0x11f   :  { %2887 = vmatprep.subr.bf16.mxu1 %v3393_v0 }
 0x120   :  { %2457 = vmatmul.mubr.msk.f32.gmra.mrb[6].mxu1 %vm81_vm5, %v583_v56 }
 0x121   :  { %2674 = vmatmul.mubr.msk.f32.gmra.mrb[6].mxu0 %vm81_vm5, %v1727_v57  ;;  %2459 = vmatprep.mubr.msk.f32.mxu1 %vm3395_vm0, %v3396_v22 }
 0x122   :  { %2676 = vmatprep.mubr.msk.f32.mxu0 %vm3395_vm0, %v3396_v22  ;;  %2889 = vmatpush3.bf16.msra.mxu1 %v2888_v59 }
 0x123   :  { %2890 = vmatprep.subr.bf16.mxu1 %v3393_v0 }
 0x124   :  { %2460 = vmatmul.mubr.msk.f32.gmra.mrb[8].mxu1 %vm81_vm5, %v584_v62 }
 0x125   :  { %2677 = vmatmul.mubr.msk.f32.gmra.mrb[8].mxu0 %vm81_vm5, %v1728_v63  ;;  %2707 = vmatprep.mubr.msk.f32.mxu1 %vm3395_vm0, %v3396_v22 }
 0x126   :  { %2892 = vmatpush3.bf16.msra.mxu1 %v2891_v8 }
 0x127   :  { %2893 = vmatprep.subr.bf16.mxu1 %v3393_v0 }
 0x12a   :  { %2895 = vmatpush3.bf16.msra.mxu1 %v2894_v14 }
 0x12b   :  { %2896 = vmatprep.subr.bf16.mxu1 %v3393_v0  ;;  %v1904_v0 = vld [vmem:[%s4064_s3 + $0x8] sm:$0xff] }
 0x12c   :  { %1915 = vperm.xlu1 %3365, %v1904_v0  }
 0x12e   :  { %2899 = vmatpush3.bf16.msk.msra.mxu1 %vm3646_vm4, %v2897_v3 }
 0x130   :  { %1920 = vperm.xlu1 %3365, %v1905_v16  }
 0x134   :  { %1930 = vperm.xlu1 %3365, %v1907_v17  }
 0x18e   :  { %v1911_v41 = vpop.permute.xlu0 %1910 }
 0x192   :  { %v1926_v49 = vpop.permute.xlu0 %1925 }
 0x1ab   :  { %v1916_v45 = vpop.permute.xlu1 %1915 }
 0x1e7   :  { %v691_v19 = vpop.f32.mrb[0].mxu1 }
 0x1e8   :  { %v2449_v20 = vpop.f32.mrb[1].mxu1  ;;  %v1860_v21 = vpop.f32.mrb[0].mxu0 }
 0x1e9   :  { %v2900_v23 = vadd.f32 %v1860_v21, %v691_v19  ;;  %v2666_v24 = vpop.f32.mrb[1].mxu0 }
 0x1eb   :  { %v696_v25 = vpop.f32.mrb[2].mxu1  ;;  %2708 = vmatmul.mubr.msk.f32.vlgmr.msra.gmra.mrb[10].mxu1 %vm1933_vm11, %v2900_v23 }
 0x1ec   :  { %v2452_v9 = vpop.f32.mrb[3].mxu1  ;;  %v1865_v10 = vpop.f32.mrb[2].mxu0  ;;  %2710 = vmatprep.mubr.msk.f32.mxu1 %vm3395_vm0, %v3396_v22 }
 0x1ed   :  { %v2901_v32 = vadd.f32 %v1865_v10, %v696_v25  ;;  %v2669_v11 = vpop.f32.mrb[3].mxu0 }
 0x1ef   :  { %v701_v18 = vpop.f32.mrb[4].mxu1  ;;  %2711 = vmatmul.mubr.msk.f32.gmra.mrb[12].mxu1 %vm1933_vm11, %v2901_v32 }
 0x1f0   :  { %v2455_v26 = vpop.f32.mrb[5].mxu1  ;;  %v1870_v27 = vpop.f32.mrb[4].mxu0  ;;  %2713 = vmatprep.mubr.msk.f32.mxu1 %vm3395_vm0, %v3396_v22 }
 0x1f1   :  { %v2902_v28 = vadd.f32 %v1870_v27, %v701_v18  ;;  %v2672_v29 = vpop.f32.mrb[5].mxu0 }
 0x1f3   :  { %v706_v30 = vpop.f32.mrb[6].mxu1  ;;  %2714 = vmatmul.mubr.msk.f32.gmra.mrb[14].mxu1 %vm1933_vm11, %v2902_v28 }
 0x1f4   :  { %v2458_v35 = vpop.f32.mrb[7].mxu1  ;;  %v1875_v36 = vpop.f32.mrb[6].mxu0  ;;  %2716 = vmatprep.mubr.msk.f32.mxu1 %vm3395_vm0, %v3396_v22 }
 0x1f5   :  { %v2903_v37 = vadd.f32 %v1875_v36, %v706_v30  ;;  %v2675_v1 = vpop.f32.mrb[7].mxu0 }
 0x1f7   :  { %v711_v2 = vpop.f32.mrb[8].mxu1  ;;  %2717 = vmatmul.mubr.msk.f32.gmra.mrb[16].mxu1 %vm1933_vm11, %v2903_v37 }
 0x1f8   :  { %v2461_v33 = vpop.f32.mrb[9].mxu1  ;;  %v1880_v38 = vpop.f32.mrb[8].mxu0  ;;  %2719 = vmatprep.mubr.msk.f32.mxu1 %vm3395_vm0, %v3396_v22 }
 0x1f9   :  { %v2904_v39 = vadd.f32 %v1880_v38, %v711_v2  ;;  %v2678_v40 = vpop.f32.mrb[9].mxu0  ;;  %v1921_v22 = vpop.permute.xlu1 %1920 }
 0x1fb   :  { %2720 = vmatmul.mubr.msk.f32.gmra.mrb[18].mxu1 %vm1933_vm11, %v2904_v39 }
 0x1fd   :  { %v1931_v53 = vpop.permute.xlu1 %1930 }
 0x2be   :  { %v2018_v42 = vpop.f32.mrb[10].mxu1 }
 0x2bf   :  { %v2019_v43 = vadd.f32 %v2018_v42, %v1911_v41  ;;  %v2709_v44 = vpop.f32.mrb[11].mxu1 }
 0x2c1   :  { %2043 = vst.msk [vmem:[%s4065_s4] sm:$0xff] %vm2042_vm12, %v2019_v43 }
 0x2c2   :  { %v2023_v46 = vpop.f32.mrb[12].mxu1 }
 0x2c3   :  { %v2024_v47 = vadd.f32 %v2023_v46, %v1916_v45  ;;  %v2712_v48 = vpop.f32.mrb[13].mxu1 }
 0x2c5   :  { %2044 = vst.msk [vmem:[%s4065_s4 + $0x8] sm:$0xff] %vm2042_vm12, %v2024_v47 }
 0x2c6   :  { %v2028_v6 = vpop.f32.mrb[14].mxu1 }
 0x2c7   :  { %v2029_v7 = vadd.f32 %v2028_v6, %v1921_v22  ;;  %v2715_v34 = vpop.f32.mrb[15].mxu1 }
 0x2c9   :  { %2045 = vst.msk [vmem:[%s4065_s4 + $0x10] sm:$0xff] %vm2042_vm12, %v2029_v7 }
 0x2ca   :  { %v2033_v50 = vpop.f32.mrb[16].mxu1 }
 0x2cb   :  { %v2034_v51 = vadd.f32 %v2033_v50, %v1926_v49  ;;  %v2718_v52 = vpop.f32.mrb[17].mxu1 }
 0x2cd   :  { %2046 = vst.msk [vmem:[%s4065_s4 + $0x18] sm:$0xff] %vm2042_vm12, %v2034_v51 }
 0x2ce   :  { %v2038_v54 = vpop.f32.mrb[18].mxu1 }
 0x2cf   :  { %v2039_v55 = vadd.f32 %v2038_v54, %v1931_v53  ;;  %v2721_v56 = vpop.f32.mrb[19].mxu1 }
 0x2d1   :  { %2048 = vst.msk [vmem:[%s4065_s4 + $0x20] sm:$0x1f] %vm2047_vm13, %v2039_v55 }
 0x2d2   :  { %2053 = vsyncpa [#allocation3], 1 }

</bundles_post_ra>
